<compile_context>
chip_gen: v7x
topology: tpu7x:2x2x1
jax: 0.10.0
libtpu: 0.0.40
codegen_flags: <defaults>
</compile_context>

<pallas_src>
import jax
import jax.numpy as jnp
from jax.experimental import pallas as pl
from jax.experimental.pallas import tpu as pltpu


# ---------------------------------------------------------------- kernel ----
def mlp_kernel(x_ref, w1_ref, b1_ref, w2_ref, b2_ref, w3_ref, b3_ref, o_ref):
    # x arrives f32; cast to bf16 on the VPU so the MXU runs at bf16 rate.
    x = x_ref[...].astype(jnp.bfloat16)

    # layer 1: Linear + ReLU (accumulate f32 on the MXU; elementwise math f32)
    h1 = jnp.dot(x, w1_ref[...], preferred_element_type=jnp.float32) + b1_ref[...]
    h1 = jnp.maximum(h1, 0.0).astype(jnp.bfloat16)

    # layer 2: Linear + ReLU
    h2 = jnp.dot(h1, w2_ref[...], preferred_element_type=jnp.float32) + b2_ref[...]
    h2 = jnp.maximum(h2, 0.0).astype(jnp.bfloat16)

    # layer 3: Linear (logits).  Padded label lanes carry bias=-1e30, so the
    # full-128-lane max/sum below are exact for the real labels.
    logits = jnp.dot(h2, w3_ref[...], preferred_element_type=jnp.float32) + b3_ref[...]

    # log_softmax over dim=1, numerically stable, fully dense over 128 lanes.
    m = jnp.max(logits, axis=1, keepdims=True)
    shifted = logits - m
    lse = jnp.log(jnp.sum(jnp.exp(shifted), axis=1, keepdims=True))
    o_ref[...] = (shifted - lse).astype(o_ref.dtype)


# --------------------------------------------------------------- helpers ----
def _round_up(x, m):
    return ((x + m - 1) // m) * m


def _pad2d(a, rows, cols):
    r, c = a.shape
    return jnp.pad(a, ((0, rows - r), (0, cols - c)))


def _pick_tb(batch):
    """Batch tile: ~8 grid steps (>=4 per v7x TC), multiple of 16, capped at 512
    so the working set stays well under v5e's 16 MiB default scoped VMEM."""
    MIN_STEPS = 8
    MAX_TB = 512
    tb = _round_up(max(16, -(-batch // MIN_STEPS)), 16)
    return min(tb, MAX_TB)


# ----------------------------------------------------- one-time param prep ----
def prepare_params(params):
    """Pad + cast weights once (hoisted out of the per-call path).

    params: (w1, b1, w2, b2, w3, b3) with w of shape (in, out) and b of shape (1, out).
    Returns a dict of padded device arrays plus the padded dims.
    """
    w1, b1, w2, b2, w3, b3 = params
    in_feats = w1.shape[0]
    n_labels = w3.shape[1]

    IN = _round_up(in_feats, 128)      # 768 -> 768
    L1 = _round_up(w1.shape[1], 256)   # 400 -> 512
    L2 = _round_up(w2.shape[1], 256)   # 200 -> 256
    NL = _round_up(n_labels, 128)      # 70  -> 128

    w1p = _pad2d(w1, IN, L1).astype(jnp.bfloat16)
    w2p = _pad2d(w2, L1, L2).astype(jnp.bfloat16)
    w3p = _pad2d(w3, L2, NL).astype(jnp.bfloat16)
    b1p = _pad2d(b1, 1, L1).astype(jnp.float32)
    b2p = _pad2d(b2, 1, L2).astype(jnp.float32)
    # Padded label lanes get a huge negative bias so log_softmax never sees them.
    b3p = jnp.full((1, NL), -1e30, jnp.float32).at[:, :n_labels].set(b3[0])

    return {
        "w1": w1p, "b1": b1p, "w2": w2p, "b2": b2p, "w3": w3p, "b3": b3p,
        "in_feats": in_feats, "n_labels": n_labels,
        "IN": IN, "L1": L1, "L2": L2, "NL": NL,
    }


# --------------------------------------------------------------- wrapper ----
def mlp_forward(x, prep):
    """x: (batch, in_feats) f32.  prep: output of prepare_params()."""
    batch, in_feats = x.shape
    assert in_feats == prep["in_feats"]
    IN, L1, L2, NL = prep["IN"], prep["L1"], prep["L2"], prep["NL"]
    n_labels = prep["n_labels"]

    TB = _pick_tb(batch)
    pB = _round_up(batch, TB)

    # Only pad x (f32) — batch dim to a tile multiple, feature dim to 128-align
    # (no-op for in_feats=768).  bf16 cast happens inside the kernel.
    xp = x if (pB == batch and IN == in_feats) else _pad2d(x, pB, IN)

    grid = (pB // TB,)

    flops = 2 * pB * (IN * L1 + L1 * L2 + L2 * NL)
    bytes_accessed = (
        pB * IN * 4                                   # x (f32 in)
        + (IN * L1 + L1 * L2 + L2 * NL) * 2           # bf16 weights
        + (L1 + L2 + NL) * 4                          # f32 biases
        + pB * NL * 4                                 # f32 out
    )

    out = pl.pallas_call(
        mlp_kernel,
        out_shape=jax.ShapeDtypeStruct((pB, NL), jnp.float32),
        grid_spec=pltpu.PrefetchScalarGridSpec(
            num_scalar_prefetch=0,
            grid=grid,
            in_specs=[
                pl.BlockSpec((TB, IN), lambda i: (i, 0)),   # x: tiled over batch (f32)
                pl.BlockSpec((IN, L1), lambda i: (0, 0)),   # weights/biases: VMEM resident
                pl.BlockSpec((1, L1), lambda i: (0, 0)),
                pl.BlockSpec((L1, L2), lambda i: (0, 0)),
                pl.BlockSpec((1, L2), lambda i: (0, 0)),
                pl.BlockSpec((L2, NL), lambda i: (0, 0)),
                pl.BlockSpec((1, NL), lambda i: (0, 0)),
            ],
            out_specs=pl.BlockSpec((TB, NL), lambda i: (i, 0)),
        ),
        compiler_params=pltpu.CompilerParams(
            dimension_semantics=("parallel",),   # v7x: shard batch over both TCs
        ),
        cost_estimate=pl.CostEstimate(
            flops=flops,
            transcendentals=pB * NL,
            bytes_accessed=bytes_accessed,
        ),
    )(xp, prep["w1"], prep["b1"], prep["w2"], prep["b2"], prep["w3"], prep["b3"])

    return out[:batch, :n_labels]


# ------------------------------------------------------- params & reference ----
def init_params(key, in_feats=768, layer1=400, layer2=200, n_labels=70):
    """Deterministic synthetic init (uniform +-1/sqrt(fan_in), like nn.Linear)."""
    ks = jax.random.split(key, 6)

    def lin(kw, kb, fan_in, fan_out):
        bound = 1.0 / jnp.sqrt(fan_in)
        w = jax.random.uniform(kw, (fan_in, fan_out), jnp.float32, -bound, bound)
        b = jax.random.uniform(kb, (1, fan_out), jnp.float32, -bound, bound)
        return w, b

    w1, b1 = lin(ks[0], ks[1], in_feats, layer1)
    w2, b2 = lin(ks[2], ks[3], layer1, layer2)
    w3, b3 = lin(ks[4], ks[5], layer2, n_labels)
    return (w1, b1, w2, b2, w3, b3)


def mlp_reference(x, params):
    """Full-precision f32 reference (matches the PyTorch module)."""
    w1, b1, w2, b2, w3, b3 = params
    h1 = jnp.maximum(x @ w1 + b1, 0.0)
    h2 = jnp.maximum(h1 @ w2 + b2, 0.0)
    logits = h2 @ w3 + b3
    return jax.nn.log_softmax(logits, axis=1)


# ------------------------------------------------------------------ main ----
if __name__ == "__main__":
    key = jax.random.PRNGKey(0)
    k_x1, k_x2, k_p = jax.random.split(key, 3)

    in_feats, layer1, layer2, n_labels = 768, 400, 200, 70
    params = init_params(k_p, in_feats, layer1, layer2, n_labels)
    prep = prepare_params(params)          # one-time pad + bf16 cast of weights

    # Case 1: tiny batch (single-tile grid).
    x1 = jax.random.normal(k_x1, (8, in_feats), dtype=jnp.float32)
    out1 = jax.block_until_ready(mlp_forward(x1, prep))
    ref1 = mlp_reference(x1, params)
    assert out1.shape == (8, n_labels)
    # bf16 matmul inputs -> loosened tolerance vs. the f32 reference.
    assert jnp.allclose(out1, ref1, atol=3e-2, rtol=3e-2)

    # Case 2: batch not a multiple of the tile (exercises padding + multi-step grid).
    x2 = jax.random.normal(k_x2, (300, in_feats), dtype=jnp.float32)
    out2 = jax.block_until_ready(mlp_forward(x2, prep))
    ref2 = mlp_reference(x2, params)
    assert out2.shape == (300, n_labels)
    assert jnp.allclose(out2, ref2, atol=3e-2, rtol=3e-2)

    print("KERNEL_OK")
</pallas_src>

<mosaic_0001>
module attributes {stable_mosaic.version = 11 : i64} {
  func.func @mlp_kernel(%arg0: i32, %arg1: memref<16x768xf32, #tpu.memory_space<vmem>>, %arg2: memref<768x512xbf16, #tpu.memory_space<vmem>>, %arg3: memref<1x512xf32, #tpu.memory_space<vmem>>, %arg4: memref<512x256xbf16, #tpu.memory_space<vmem>>, %arg5: memref<1x256xf32, #tpu.memory_space<vmem>>, %arg6: memref<256x128xbf16, #tpu.memory_space<vmem>>, %arg7: memref<1x128xf32, #tpu.memory_space<vmem>>, %arg8: memref<16x128xf32, #tpu.memory_space<vmem>>) attributes {dimension_semantics = [#tpu.dimension_semantics<parallel>], iteration_bounds = array<i64: 1>, scalar_prefetch = 0 : i64, scratch_operands = 0 : i64, tpu.core_type = #tpu.core_type<tc>, window_params = [{transform_indices = @transform_0, window_bounds = array<i64: 16, 768>}, {pipeline_mode = #tpu.pipeline_mode<synchronous>, transform_indices = @transform_1, window_bounds = array<i64: 768, 512>}, {pipeline_mode = #tpu.pipeline_mode<synchronous>, transform_indices = @transform_2, window_bounds = array<i64: 1, 512>}, {pipeline_mode = #tpu.pipeline_mode<synchronous>, transform_indices = @transform_3, window_bounds = array<i64: 512, 256>}, {pipeline_mode = #tpu.pipeline_mode<synchronous>, transform_indices = @transform_4, window_bounds = array<i64: 1, 256>}, {pipeline_mode = #tpu.pipeline_mode<synchronous>, transform_indices = @transform_5, window_bounds = array<i64: 256, 128>}, {pipeline_mode = #tpu.pipeline_mode<synchronous>, transform_indices = @transform_6, window_bounds = array<i64: 1, 128>}, {transform_indices = @transform_7, window_bounds = array<i64: 16, 128>}]} {
    %c0 = arith.constant 0 : index
    %c0_0 = arith.constant 0 : index
    %0 = vector.load %arg1[%c0, %c0_0] : memref<16x768xf32, #tpu.memory_space<vmem>>, vector<16x768xf32>
    %1 = arith.truncf %0 : vector<16x768xf32> to vector<16x768xbf16>
    %c0_1 = arith.constant 0 : index
    %c0_2 = arith.constant 0 : index
    %2 = vector.load %arg2[%c0_1, %c0_2] : memref<768x512xbf16, #tpu.memory_space<vmem>>, vector<768x512xbf16>
    %cst = arith.constant dense<0.000000e+00> : vector<16x512xf32>
    %3 = tpu.matmul %1, %2, %cst {dimension_numbers = #tpu.dot_dimension_numbers<[1], [0], [0], [1], [0, 0, 1, 1], [], []>} : vector<16x768xbf16>, vector<768x512xbf16>, vector<16x512xf32> -> vector<16x512xf32>
    %c0_3 = arith.constant 0 : index
    %c0_4 = arith.constant 0 : index
    %4 = vector.load %arg3[%c0_3, %c0_4] : memref<1x512xf32, #tpu.memory_space<vmem>>, vector<1x512xf32>
    %5 = vector.broadcast %4 : vector<1x512xf32> to vector<16x512xf32>
    %6 = arith.addf %3, %5 : vector<16x512xf32>
    %cst_5 = arith.constant 0.000000e+00 : f32
    %7 = vector.broadcast %cst_5 : f32 to vector<16x512xf32>
    %8 = arith.maximumf %6, %7 : vector<16x512xf32>
    %9 = arith.truncf %8 : vector<16x512xf32> to vector<16x512xbf16>
    %c0_6 = arith.constant 0 : index
    %c0_7 = arith.constant 0 : index
    %10 = vector.load %arg4[%c0_6, %c0_7] : memref<512x256xbf16, #tpu.memory_space<vmem>>, vector<512x256xbf16>
    %cst_8 = arith.constant dense<0.000000e+00> : vector<16x256xf32>
    %11 = tpu.matmul %9, %10, %cst_8 {dimension_numbers = #tpu.dot_dimension_numbers<[1], [0], [0], [1], [0, 0, 1, 1], [], []>} : vector<16x512xbf16>, vector<512x256xbf16>, vector<16x256xf32> -> vector<16x256xf32>
    %c0_9 = arith.constant 0 : index
    %c0_10 = arith.constant 0 : index
    %12 = vector.load %arg5[%c0_9, %c0_10] : memref<1x256xf32, #tpu.memory_space<vmem>>, vector<1x256xf32>
    %13 = vector.broadcast %12 : vector<1x256xf32> to vector<16x256xf32>
    %14 = arith.addf %11, %13 : vector<16x256xf32>
    %cst_11 = arith.constant 0.000000e+00 : f32
    %15 = vector.broadcast %cst_11 : f32 to vector<16x256xf32>
    %16 = arith.maximumf %14, %15 : vector<16x256xf32>
    %17 = arith.truncf %16 : vector<16x256xf32> to vector<16x256xbf16>
    %c0_12 = arith.constant 0 : index
    %c0_13 = arith.constant 0 : index
    %18 = vector.load %arg6[%c0_12, %c0_13] : memref<256x128xbf16, #tpu.memory_space<vmem>>, vector<256x128xbf16>
    %cst_14 = arith.constant dense<0.000000e+00> : vector<16x128xf32>
    %19 = tpu.matmul %17, %18, %cst_14 {dimension_numbers = #tpu.dot_dimension_numbers<[1], [0], [0], [1], [0, 0, 1, 1], [], []>} : vector<16x256xbf16>, vector<256x128xbf16>, vector<16x128xf32> -> vector<16x128xf32>
    %c0_15 = arith.constant 0 : index
    %c0_16 = arith.constant 0 : index
    %20 = vector.load %arg7[%c0_15, %c0_16] : memref<1x128xf32, #tpu.memory_space<vmem>>, vector<1x128xf32>
    %21 = vector.broadcast %20 : vector<1x128xf32> to vector<16x128xf32>
    %22 = arith.addf %19, %21 : vector<16x128xf32>
    %cst_17 = arith.constant dense<0xFF800000> : vector<16xf32>
    %23 = vector.multi_reduction <maximumf>, %22, %cst_17 [1] : vector<16x128xf32> to vector<16xf32>
    %24 = vector.shape_cast %23 : vector<16xf32> to vector<16x1xf32>
    %25 = vector.broadcast %24 : vector<16x1xf32> to vector<16x128xf32>
    %26 = arith.subf %22, %25 : vector<16x128xf32>
    %27 = math.exp %26 : vector<16x128xf32>
    %cst_18 = arith.constant dense<0.000000e+00> : vector<16xf32>
    %28 = vector.multi_reduction <add>, %27, %cst_18 [1] : vector<16x128xf32> to vector<16xf32>
    %29 = vector.shape_cast %28 : vector<16xf32> to vector<16x1xf32>
    %30 = math.log %29 : vector<16x1xf32>
    %31 = vector.broadcast %30 : vector<16x1xf32> to vector<16x128xf32>
    %32 = arith.subf %26, %31 : vector<16x128xf32>
    %c0_19 = arith.constant 0 : index
    %c0_20 = arith.constant 0 : index
    %33 = vector.load %arg8[%c0_19, %c0_20] : memref<16x128xf32, #tpu.memory_space<vmem>>, vector<16x128xf32>
    tpu.vector_store %arg8[%c0_19, %c0_20], %32 {strides = array<i32>} : memref<16x128xf32, #tpu.memory_space<vmem>>, vector<16x128xf32>,
    return
  }
  func.func @transform_0(%arg0: i32) -> (i32, i32) {
    %c0_i32 = arith.constant 0 : i32
    %c0_i32_0 = arith.constant 0 : i32
    return %arg0, %c0_i32 : i32, i32
  }
  func.func @transform_1(%arg0: i32) -> (i32, i32) {
    %c0_i32 = arith.constant 0 : i32
    %c0_i32_0 = arith.constant 0 : i32
    %c0_i32_1 = arith.constant 0 : i32
    return %c0_i32, %c0_i32_0 : i32, i32
  }
  func.func @transform_2(%arg0: i32) -> (i32, i32) {
    %c0_i32 = arith.constant 0 : i32
    %c0_i32_0 = arith.constant 0 : i32
    %c0_i32_1 = arith.constant 0 : i32
    return %c0_i32, %c0_i32_0 : i32, i32
  }
  func.func @transform_3(%arg0: i32) -> (i32, i32) {
    %c0_i32 = arith.constant 0 : i32
    %c0_i32_0 = arith.constant 0 : i32
    %c0_i32_1 = arith.constant 0 : i32
    return %c0_i32, %c0_i32_0 : i32, i32
  }
  func.func @transform_4(%arg0: i32) -> (i32, i32) {
    %c0_i32 = arith.constant 0 : i32
    %c0_i32_0 = arith.constant 0 : i32
    %c0_i32_1 = arith.constant 0 : i32
    return %c0_i32, %c0_i32_0 : i32, i32
  }
  func.func @transform_5(%arg0: i32) -> (i32, i32) {
    %c0_i32 = arith.constant 0 : i32
    %c0_i32_0 = arith.constant 0 : i32
    %c0_i32_1 = arith.constant 0 : i32
    return %c0_i32, %c0_i32_0 : i32, i32
  }
  func.func @transform_6(%arg0: i32) -> (i32, i32) {
    %c0_i32 = arith.constant 0 : i32
    %c0_i32_0 = arith.constant 0 : i32
    %c0_i32_1 = arith.constant 0 : i32
    return %c0_i32, %c0_i32_0 : i32, i32
  }
  func.func @transform_7(%arg0: i32) -> (i32, i32) {
    %c0_i32 = arith.constant 0 : i32
    %c0_i32_0 = arith.constant 0 : i32
    return %arg0, %c0_i32 : i32, i32
  }
}

</mosaic_0001>

<bundles_post_ra>
// kernel: tpu_custom_call.1
= control target key start
LH: loop header
LB: loop body
LE: loop exit
PB: predicated region body
PF: predicated region fallthrough
CT: control target
= control target key end

     0   :  { %12 = vsyncpa [#allocation3], 0  ;;  %s3288_s0 = inlined_call_operand.hbm [shape: f32[16,768], index: 0, kind: input, shape index: {}]   ;;  %s3289_s1 = inlined_call_operand.hbm [shape: bf16[768,512], index: 1, kind: input, shape index: {}]   ;;  %s3290_s2 = inlined_call_operand.vmem [shape: f32[1,512], index: 2, kind: input, shape index: {}]   ;;  %s3291_s3 = inlined_call_operand.hbm [shape: bf16[512,256], index: 3, kind: input, shape index: {}]   ;;  %s3292_s4 = inlined_call_operand.vmem [shape: f32[1,256], index: 4, kind: input, shape index: {}]   ;;  %s3293_s5 = inlined_call_operand.hbm [shape: bf16[256,128], index: 5, kind: input, shape index: {}]   ;;  %s3294_s6 = inlined_call_operand.vmem [shape: f32[1,128], index: 6, kind: input, shape index: {}]   ;;  %s3295_s7 = inlined_call_operand.hbm [shape: f32[16,128], index: 7, kind: output, shape index: {}]  }
   0x1   :  { %13 = vsyncpa [#allocation6], 0 }
   0x2   :  { %14 = vsyncpa [#allocation9], 0 }
   0x3   :  { %15 = vsyncpa [#allocation4], 0  ;;  %s3116_s24 = smov [#allocation5]   ;;  %s2998_s28 = scalar_lea.hbm %s3289_s1, 24576 }
   0x4   :  { %s33_s25 = sshll.u32 %s3116_s24, 4  ;;  %p2999_p0 = scmp.ne.s32.totalorder %s3289_s1, %s2998_s28  ;;  %s34_s25 = int_to_ptr.vmem [resolvable:$true] %s33_s25 }
   0x5   :  { %p3002_p1 = scmp.lt.u32.totalorder %s2998_s28, %s3289_s1 }
   0x7   :  { %p3004_p2 = pnand %p3002_p1, %p2999_p0 }
   0x9   :  { %3007 = shalt.err (!%p3004_p2)
}
   0xa   :  { %s3008_s10 = scalar_lea.vmem %s34_s25, 24576  ;;  %p3013_p4 = scmp.lt.s32.totalorder %s34_s25, %s34_s25 }
   0xb   :  { %p3009_p3 = scmp.ne.s32.totalorder %s34_s25, %s3008_s10  ;;  %p3014_p5 = scmp.lt.s32.totalorder %s3008_s10, %s3008_s10 }
   0xd   :  { %p3015_p6 = por %p3014_p5, %p3013_p4 }
   0xf   :  { %p3016_p7 = pnand %p3015_p6, %p3009_p3 }
  0x11   :  { %3019 = shalt.err (!%p3016_p7)
}
  0x12   :  { %s3117_s11 = smov 256   ;;  %s3118_s12 = smov 16  }
  0x13   :  { %39 = dma.hbm_to_vmem [thread:$0]  %s3289_s1, 24576, %s34_s25, [#allocation6], %s3117_s11, %s3117_s11, %s3118_s12  }
  0x14   :  { %s3119_s15 = smov [#allocation2]   ;;  %s3020_s19 = scalar_lea.hbm %s3288_s0, 1536 }
  0x15   :  { %s21_s16 = sshll.u32 %s3119_s15, 4  ;;  %p3021_p8 = scmp.ne.s32.totalorder %s3288_s0, %s3020_s19  ;;  %s22_s16 = int_to_ptr.vmem [resolvable:$true] %s21_s16 }
  0x16   :  { %p3024_p9 = scmp.lt.u32.totalorder %s3020_s19, %s3288_s0 }
  0x18   :  { %p3026_p10 = pnand %p3024_p9, %p3021_p8 }
  0x1a   :  { %3029 = shalt.err (!%p3026_p10)
}
  0x1b   :  { %s3030_s24 = scalar_lea.vmem %s22_s16, 1536  ;;  %p3035_p12 = scmp.lt.s32.totalorder %s22_s16, %s22_s16 }
  0x1c   :  { %p3031_p11 = scmp.ne.s32.totalorder %s22_s16, %s3030_s24  ;;  %p3036_p13 = scmp.lt.s32.totalorder %s3030_s24, %s3030_s24 }
  0x1e   :  { %p3037_p0 = por %p3036_p13, %p3035_p12 }
  0x20   :  { %p3038_p1 = pnand %p3037_p0, %p3031_p11 }
  0x22   :  { %3041 = shalt.err (!%p3038_p1)
}
  0x23   :  { %s3120_s1 = smov 768   ;;  %s3121_s25 = smov 48  }
  0x24   :  { %27 = dma.hbm_to_vmem [thread:$0]  %s3288_s0, 1536, %s22_s16, [#allocation3], %s3120_s1, %s3120_s1, %s3121_s25  }
  0x25   :  { %s3122_s28 = smov [#allocation7]   ;;  %s3042_s9 = scalar_lea.hbm %s3291_s3, 8192 }
  0x26   :  { %s47_s29 = sshll.u32 %s3122_s28, 4  ;;  %p3043_p2 = scmp.ne.s32.totalorder %s3291_s3, %s3042_s9  ;;  %s48_s29 = int_to_ptr.vmem [resolvable:$true] %s47_s29 }
  0x27   :  { %p3046_p3 = scmp.lt.u32.totalorder %s3042_s9, %s3291_s3 }
  0x29   :  { %p3048_p4 = pnand %p3046_p3, %p3043_p2 }
  0x2b   :  { %3051 = shalt.err (!%p3048_p4)
}
  0x2c   :  { %s3052_s14 = scalar_lea.vmem %s48_s29, 8192  ;;  %p3057_p6 = scmp.lt.s32.totalorder %s48_s29, %s48_s29 }
  0x2d   :  { %p3053_p5 = scmp.ne.s32.totalorder %s48_s29, %s3052_s14  ;;  %p3058_p7 = scmp.lt.s32.totalorder %s3052_s14, %s3052_s14 }
  0x2f   :  { %p3059_p8 = por %p3058_p7, %p3057_p6 }
  0x31   :  { %p3060_p9 = pnand %p3059_p8, %p3053_p5 }
  0x33   :  { %3063 = shalt.err (!%p3060_p9)
}
  0x34   :  { %s3123_s0 = smov 128   ;;  %s3124_s15 = smov 8  }
  0x35   :  { %53 = dma.hbm_to_vmem [thread:$0]  %s3291_s3, 8192, %s48_s29, [#allocation6], %s3123_s0, %s3123_s0, %s3124_s15  }
  0x36   :  { %s3125_s18 = smov [#allocation8]   ;;  %s3064_s22 = scalar_lea.hbm %s3293_s5, 2048 }
  0x37   :  { %s61_s19 = sshll.u32 %s3125_s18, 4  ;;  %p3065_p10 = scmp.ne.s32.totalorder %s3293_s5, %s3064_s22  ;;  %s62_s19 = int_to_ptr.vmem [resolvable:$true] %s61_s19 }
  0x38   :  { %p3068_p11 = scmp.lt.u32.totalorder %s3064_s22, %s3293_s5 }
  0x3a   :  { %p3070_p12 = pnand %p3068_p11, %p3065_p10 }
  0x3c   :  { %3073 = shalt.err (!%p3070_p12)
}
  0x3d   :  { %s3074_s26 = scalar_lea.vmem %s62_s19, 2048  ;;  %p3079_p0 = scmp.lt.s32.totalorder %s62_s19, %s62_s19 }
  0x3e   :  { %p3075_p13 = scmp.ne.s32.totalorder %s62_s19, %s3074_s26  ;;  %p3080_p1 = scmp.lt.s32.totalorder %s3074_s26, %s3074_s26 }
  0x40   :  { %p3081_p2 = por %p3080_p1, %p3079_p0 }
  0x42   :  { %p3082_p3 = pnand %p3081_p2, %p3075_p13 }
  0x44   :  { %3085 = shalt.err (!%p3082_p3)
}
  0x45   :  { %s3126_s3 = smov 64   ;;  %s3127_s27 = smov 4  }
  0x46   :  { %67 = dma.hbm_to_vmem [thread:$0]  %s3293_s5, 2048, %s62_s19, [#allocation9], %s3126_s3, %s3126_s3, %s3127_s27  }
  0x47   :  { %3108 = dma.done.wait [#allocation3], 1536  }
  0x48   :  { %3109 = vsyncadd [#allocation3], 4294965760 }
  0x49   :  { %3110 = dma.done.wait [#allocation6], 32768  }
  0x4a   :  { %3111 = vsyncadd [#allocation6], 4294934528 }
  0x4b   :  { %3112 = dma.done.wait [#allocation9], 2048  }
  0x4c   :  { %3113 = vsyncadd [#allocation9], 4294965248  ;;  %v2590_v0 = vld [vmem:[#allocation5 + $0x4] ss:$16 sps:$4 sm:$0xff]   ;;  %v2594_v2 = vld [vmem:[#allocation5] ss:$16 sps:$4 sm:$0xff]  }
  0x4d   :  { %v2592_v1 = vld [vmem:[#allocation5 + $0x204] ss:$16 sps:$4 sm:$0xff]   ;;  %1275 = vmatprep.subr.bf16.mxu1 %v2590_v0  ;;  %v2595_v3 = vld [vmem:[#allocation5 + $0x200] ss:$16 sps:$4 sm:$0xff]   ;;  %v84_v46 = vld [vmem:[#allocation2 + $0x8] sm:$0xff] }
  0x4e   :  { %1318 = vmatprep.subr.bf16.mxu0 %v2592_v1  ;;  %v2596_v4 = vld [vmem:[#allocation5 + $0x24] ss:$16 sps:$4 sm:$0xff]   ;;  %1276 = vmatpush1.bf16.msra.mxu1 %v2594_v2  ;;  %v2600_v6 = vld [vmem:[#allocation5 + $0x20] ss:$16 sps:$4 sm:$0xff]   ;;  %v90_v49 = vld [vmem:[#allocation2 + $0x38] sm:$0xff] }
  0x4f   :  { %1319 = vmatpush1.bf16.msra.mxu0 %v2595_v3  ;;  %v2598_v5 = vld [vmem:[#allocation5 + $0x224] ss:$16 sps:$4 sm:$0xff]   ;;  %1277 = vmatprep.subr.bf16.mxu1 %v2596_v4  ;;  %v2601_v7 = vld [vmem:[#allocation5 + $0x220] ss:$16 sps:$4 sm:$0xff]   ;;  %v3220_v50 = vpack.c.bf16 %v90_v49, %v84_v46  ;;  %v86_v51 = vld [vmem:[#allocation2 + $0x18] sm:$0xff] }
  0x50   :  { %1320 = vmatprep.subr.bf16.mxu0 %v2598_v5  ;;  %v2602_v8 = vld [vmem:[#allocation5 + $0x44] ss:$16 sps:$4 sm:$0xff]   ;;  %v2606_v10 = vld [vmem:[#allocation5 + $0x40] ss:$16 sps:$4 sm:$0xff]   ;;  %v92_v52 = vld [vmem:[#allocation2 + $0x48] sm:$0xff] }
  0x51   :  { %v2604_v9 = vld [vmem:[#allocation5 + $0x244] ss:$16 sps:$4 sm:$0xff]   ;;  %v2607_v11 = vld [vmem:[#allocation5 + $0x240] ss:$16 sps:$4 sm:$0xff]   ;;  %v3222_v55 = vpack.c.bf16 %v92_v52, %v86_v51  ;;  %1307 = vmatprep.mubr.bf16.mxu1 %v3220_v50  ;;  %v2731_v46 = vld [vmem:[#allocation5 + $0xe8] ss:$16 sps:$4 sm:$0xff]  }
  0x52   :  { %1278 = vmatpush1.bf16.msra.mxu1 %v2600_v6  ;;  %v2608_v12 = vld [vmem:[#allocation5 + $0x64] ss:$16 sps:$4 sm:$0xff]   ;;  %v2612_v14 = vld [vmem:[#allocation5 + $0x60] ss:$16 sps:$4 sm:$0xff]   ;;  %v2745_v52 = vld [vmem:[#allocation5 + $0x12c] ss:$16 sps:$4 sm:$0xff]  }
  0x53   :  { %1321 = vmatpush1.bf16.msra.mxu0 %v2601_v7  ;;  %1279 = vmatprep.subr.bf16.mxu1 %v2602_v8  ;;  %v2610_v13 = vld [vmem:[#allocation5 + $0x264] ss:$16 sps:$4 sm:$0xff]   ;;  %v2613_v15 = vld [vmem:[#allocation5 + $0x260] ss:$16 sps:$4 sm:$0xff]  }
  0x54   :  { %1322 = vmatprep.subr.bf16.mxu0 %v2604_v9  ;;  %v2614_v16 = vld [vmem:[#allocation5 + $0x84] ss:$16 sps:$4 sm:$0xff]   ;;  %v2618_v18 = vld [vmem:[#allocation5 + $0x80] ss:$16 sps:$4 sm:$0xff]   ;;  %1350 = vmatprep.mubr.bf16.mxu0 %v3222_v55 }
  0x55   :  { %v2616_v17 = vld [vmem:[#allocation5 + $0x284] ss:$16 sps:$4 sm:$0xff]   ;;  %v2619_v19 = vld [vmem:[#allocation5 + $0x280] ss:$16 sps:$4 sm:$0xff]  }
  0x56   :  { %1280 = vmatpush1.bf16.msra.mxu1 %v2606_v10  ;;  %v2620_v20 = vld [vmem:[#allocation5 + $0xa4] ss:$16 sps:$4 sm:$0xff]   ;;  %v2624_v22 = vld [vmem:[#allocation5 + $0xa0] ss:$16 sps:$4 sm:$0xff]  }
  0x57   :  { %1323 = vmatpush1.bf16.msra.mxu0 %v2607_v11  ;;  %1281 = vmatprep.subr.bf16.mxu1 %v2608_v12  ;;  %v2622_v21 = vld [vmem:[#allocation5 + $0x2a4] ss:$16 sps:$4 sm:$0xff]   ;;  %v2625_v23 = vld [vmem:[#allocation5 + $0x2a0] ss:$16 sps:$4 sm:$0xff]   ;;  %v2691_v11 = vld [vmem:[#allocation5 + $0xc] ss:$16 sps:$4 sm:$0xff]  }
  0x58   :  { %1324 = vmatprep.subr.bf16.mxu0 %v2610_v13  ;;  %v2626_v24 = vld [vmem:[#allocation5 + $0xc4] ss:$16 sps:$4 sm:$0xff]   ;;  %v2630_v26 = vld [vmem:[#allocation5 + $0xc0] ss:$16 sps:$4 sm:$0xff]  }
  0x59   :  { %v2628_v25 = vld [vmem:[#allocation5 + $0x2c4] ss:$16 sps:$4 sm:$0xff]   ;;  %v2631_v27 = vld [vmem:[#allocation5 + $0x2c0] ss:$16 sps:$4 sm:$0xff]  }
  0x5a   :  { %1282 = vmatpush1.bf16.msra.mxu1 %v2612_v14  ;;  %v2632_v28 = vld [vmem:[#allocation5 + $0xe4] ss:$16 sps:$4 sm:$0xff]   ;;  %v2636_v30 = vld [vmem:[#allocation5 + $0xe0] ss:$16 sps:$4 sm:$0xff]   ;;  %v2689_v14 = vld [vmem:[#allocation5 + $0x8] ss:$16 sps:$4 sm:$0xff]  }
  0x5b   :  { %1325 = vmatpush1.bf16.msra.mxu0 %v2613_v15  ;;  %1283 = vmatprep.subr.bf16.mxu1 %v2614_v16  ;;  %v2634_v29 = vld [vmem:[#allocation5 + $0x2e4] ss:$16 sps:$4 sm:$0xff]   ;;  %v2637_v31 = vld [vmem:[#allocation5 + $0x2e0] ss:$16 sps:$4 sm:$0xff]  }
  0x5c   :  { %1326 = vmatprep.subr.bf16.mxu0 %v2616_v17  ;;  %v2638_v32 = vld [vmem:[#allocation5 + $0x104] ss:$16 sps:$4 sm:$0xff]   ;;  %v2642_v34 = vld [vmem:[#allocation5 + $0x100] ss:$16 sps:$4 sm:$0xff]   ;;  %v2697_v17 = vld [vmem:[#allocation5 + $0x2c] ss:$16 sps:$4 sm:$0xff]  }
  0x5d   :  { %v2640_v33 = vld [vmem:[#allocation5 + $0x304] ss:$16 sps:$4 sm:$0xff]   ;;  %v2643_v35 = vld [vmem:[#allocation5 + $0x300] ss:$16 sps:$4 sm:$0xff]  }
  0x5e   :  { %1284 = vmatpush1.bf16.msra.mxu1 %v2618_v18  ;;  %v2644_v36 = vld [vmem:[#allocation5 + $0x124] ss:$16 sps:$4 sm:$0xff]   ;;  %v2648_v38 = vld [vmem:[#allocation5 + $0x120] ss:$16 sps:$4 sm:$0xff]  }
  0x5f   :  { %1327 = vmatpush1.bf16.msra.mxu0 %v2619_v19  ;;  %1285 = vmatprep.subr.bf16.mxu1 %v2620_v20  ;;  %v2646_v37 = vld [vmem:[#allocation5 + $0x324] ss:$16 sps:$4 sm:$0xff]   ;;  %v2649_v39 = vld [vmem:[#allocation5 + $0x320] ss:$16 sps:$4 sm:$0xff]   ;;  %v2695_v19 = vld [vmem:[#allocation5 + $0x28] ss:$16 sps:$4 sm:$0xff]  }
  0x60   :  { %1328 = vmatprep.subr.bf16.mxu0 %v2622_v21  ;;  %v2650_v40 = vld [vmem:[#allocation5 + $0x144] ss:$16 sps:$4 sm:$0xff]   ;;  %v2654_v42 = vld [vmem:[#allocation5 + $0x140] ss:$16 sps:$4 sm:$0xff]   ;;  %v2703_v21 = vld [vmem:[#allocation5 + $0x4c] ss:$16 sps:$4 sm:$0xff]  }
  0x61   :  { %v2652_v41 = vld [vmem:[#allocation5 + $0x344] ss:$16 sps:$4 sm:$0xff]   ;;  %v2655_v43 = vld [vmem:[#allocation5 + $0x340] ss:$16 sps:$4 sm:$0xff]  }
  0x62   :  { %1286 = vmatpush1.bf16.msra.mxu1 %v2624_v22  ;;  %v2656_v44 = vld [vmem:[#allocation5 + $0x164] ss:$16 sps:$4 sm:$0xff]   ;;  %v2660_v47 = vld [vmem:[#allocation5 + $0x160] ss:$16 sps:$4 sm:$0xff]  }
  0x63   :  { %1329 = vmatpush1.bf16.msra.mxu0 %v2625_v23  ;;  %1287 = vmatprep.subr.bf16.mxu1 %v2626_v24  ;;  %v2658_v45 = vld [vmem:[#allocation5 + $0x364] ss:$16 sps:$4 sm:$0xff]   ;;  %v2661_v48 = vld [vmem:[#allocation5 + $0x360] ss:$16 sps:$4 sm:$0xff]   ;;  %v2701_v23 = vld [vmem:[#allocation5 + $0x48] ss:$16 sps:$4 sm:$0xff]  }
  0x64   :  { %1330 = vmatprep.subr.bf16.mxu0 %v2628_v25  ;;  %v2662_v53 = vld [vmem:[#allocation5 + $0x184] ss:$16 sps:$4 sm:$0xff]   ;;  %v2666_v56 = vld [vmem:[#allocation5 + $0x180] ss:$16 sps:$4 sm:$0xff]   ;;  %v2709_v25 = vld [vmem:[#allocation5 + $0x6c] ss:$16 sps:$4 sm:$0xff]  }
  0x65   :  { %v2664_v54 = vld [vmem:[#allocation5 + $0x384] ss:$16 sps:$4 sm:$0xff]   ;;  %v2667_v57 = vld [vmem:[#allocation5 + $0x380] ss:$16 sps:$4 sm:$0xff]  }
  0x66   :  { %1288 = vmatpush1.bf16.msra.mxu1 %v2630_v26  ;;  %v2668_v58 = vld [vmem:[#allocation5 + $0x1a4] ss:$16 sps:$4 sm:$0xff]   ;;  %v2672_v60 = vld [vmem:[#allocation5 + $0x1a0] ss:$16 sps:$4 sm:$0xff]  }
  0x67   :  { %1331 = vmatpush1.bf16.msra.mxu0 %v2631_v27  ;;  %1289 = vmatprep.subr.bf16.mxu1 %v2632_v28  ;;  %v2670_v59 = vld [vmem:[#allocation5 + $0x3a4] ss:$16 sps:$4 sm:$0xff]   ;;  %v2673_v61 = vld [vmem:[#allocation5 + $0x3a0] ss:$16 sps:$4 sm:$0xff]   ;;  %v2707_v27 = vld [vmem:[#allocation5 + $0x68] ss:$16 sps:$4 sm:$0xff]  }
  0x68   :  { %1332 = vmatprep.subr.bf16.mxu0 %v2634_v29  ;;  %v2674_v62 = vld [vmem:[#allocation5 + $0x1c4] ss:$16 sps:$4 sm:$0xff]   ;;  %v2678_v0 = vld [vmem:[#allocation5 + $0x1c0] ss:$16 sps:$4 sm:$0xff]   ;;  %v2715_v29 = vld [vmem:[#allocation5 + $0x8c] ss:$16 sps:$4 sm:$0xff]  }
  0x69   :  { %v2676_v63 = vld [vmem:[#allocation5 + $0x3c4] ss:$16 sps:$4 sm:$0xff]   ;;  %v2679_v1 = vld [vmem:[#allocation5 + $0x3c0] ss:$16 sps:$4 sm:$0xff]  }
  0x6a   :  { %1290 = vmatpush1.bf16.msra.mxu1 %v2636_v30  ;;  %v2680_v2 = vld [vmem:[#allocation5 + $0x1e4] ss:$16 sps:$4 sm:$0xff]   ;;  %v2684_v4 = vld [vmem:[#allocation5 + $0x1e0] ss:$16 sps:$4 sm:$0xff]  }
  0x6b   :  { %1333 = vmatpush1.bf16.msra.mxu0 %v2637_v31  ;;  %1291 = vmatprep.subr.bf16.mxu1 %v2638_v32  ;;  %v2682_v3 = vld [vmem:[#allocation5 + $0x3e4] ss:$16 sps:$4 sm:$0xff]   ;;  %v2685_v5 = vld [vmem:[#allocation5 + $0x3e0] ss:$16 sps:$4 sm:$0xff]   ;;  %v2713_v31 = vld [vmem:[#allocation5 + $0x88] ss:$16 sps:$4 sm:$0xff]  }
  0x6c   :  { %1334 = vmatprep.subr.bf16.mxu0 %v2640_v33  ;;  %v83_v6 = vld [vmem:[#allocation2] sm:$0xff]  ;;  %v89_v7 = vld [vmem:[#allocation2 + $0x30] sm:$0xff]  ;;  %v2721_v33 = vld [vmem:[#allocation5 + $0xac] ss:$16 sps:$4 sm:$0xff]  }
  0x6d   :  { %v2688_v8 = vld [vmem:[#allocation5 + $0x404] ss:$16 sps:$4 sm:$0xff]   ;;  %v3226_v12 = vpack.c.bf16 %v89_v7, %v83_v6  ;;  %v2686_v13 = vld [vmem:[#allocation5 + $0x400] ss:$16 sps:$4 sm:$0xff]   ;;  %v2767_v7 = vld [vmem:[#allocation5 + $0x1a8] ss:$16 sps:$4 sm:$0xff]  }
  0x6e   :  { %1292 = vmatpush1.bf16.msra.mxu1 %v2642_v34  ;;  %v85_v9 = vld [vmem:[#allocation2 + $0x10] sm:$0xff]  ;;  %v91_v10 = vld [vmem:[#allocation2 + $0x40] sm:$0xff] }
  0x6f   :  { %1335 = vmatpush1.bf16.msra.mxu0 %v2643_v35  ;;  %1293 = vmatprep.subr.bf16.mxu1 %v2644_v36  ;;  %v3228_v15 = vpack.c.bf16 %v91_v10, %v85_v9  ;;  %v2694_v16 = vld [vmem:[#allocation5 + $0x424] ss:$16 sps:$4 sm:$0xff]   ;;  %v2692_v18 = vld [vmem:[#allocation5 + $0x420] ss:$16 sps:$4 sm:$0xff]   ;;  %v2719_v35 = vld [vmem:[#allocation5 + $0xa8] ss:$16 sps:$4 sm:$0xff]  }
  0x70   :  { %1336 = vmatprep.subr.bf16.mxu0 %v2646_v37  ;;  %v2700_v20 = vld [vmem:[#allocation5 + $0x444] ss:$16 sps:$4 sm:$0xff]   ;;  %v2698_v22 = vld [vmem:[#allocation5 + $0x440] ss:$16 sps:$4 sm:$0xff]   ;;  %v2727_v37 = vld [vmem:[#allocation5 + $0xcc] ss:$16 sps:$4 sm:$0xff]  }
  0x71   :  { %v2706_v24 = vld [vmem:[#allocation5 + $0x464] ss:$16 sps:$4 sm:$0xff]   ;;  %v2704_v26 = vld [vmem:[#allocation5 + $0x460] ss:$16 sps:$4 sm:$0xff]   ;;  %v2775_v9 = vld [vmem:[#allocation5 + $0x1cc] ss:$16 sps:$4 sm:$0xff]  }
  0x72   :  { %1294 = vmatpush1.bf16.msra.mxu1 %v2648_v38  ;;  %v2712_v28 = vld [vmem:[#allocation5 + $0x484] ss:$16 sps:$4 sm:$0xff]   ;;  %v2710_v30 = vld [vmem:[#allocation5 + $0x480] ss:$16 sps:$4 sm:$0xff]  }
  0x73   :  { %1337 = vmatpush1.bf16.msra.mxu0 %v2649_v39  ;;  %1295 = vmatprep.subr.bf16.mxu1 %v2650_v40  ;;  %v2718_v32 = vld [vmem:[#allocation5 + $0x4a4] ss:$16 sps:$4 sm:$0xff]   ;;  %v2716_v34 = vld [vmem:[#allocation5 + $0x4a0] ss:$16 sps:$4 sm:$0xff]   ;;  %v2725_v39 = vld [vmem:[#allocation5 + $0xc8] ss:$16 sps:$4 sm:$0xff]  }
  0x74   :  { %1338 = vmatprep.subr.bf16.mxu0 %v2652_v41  ;;  %v2724_v36 = vld [vmem:[#allocation5 + $0x4c4] ss:$16 sps:$4 sm:$0xff]   ;;  %v2722_v38 = vld [vmem:[#allocation5 + $0x4c0] ss:$16 sps:$4 sm:$0xff]   ;;  %v88_v41 = vld [vmem:[#allocation2 + $0x28] sm:$0xff] }
  0x75   :  { %v2730_v40 = vld [vmem:[#allocation5 + $0x4e4] ss:$16 sps:$4 sm:$0xff]   ;;  %v2734_v49 = vld [vmem:[#allocation5 + $0x500] ss:$16 sps:$4 sm:$0xff]  }
  0x76   :  { %1296 = vmatpush1.bf16.msra.mxu1 %v2654_v42  ;;  %v94_v42 = vld [vmem:[#allocation2 + $0x58] sm:$0xff]  ;;  %v2742_v51 = vld [vmem:[#allocation5 + $0x524] ss:$16 sps:$4 sm:$0xff]   ;;  %v2764_v6 = vld [vmem:[#allocation5 + $0x5a0] ss:$16 sps:$4 sm:$0xff]  }
  0x77   :  { %1339 = vmatpush1.bf16.msra.mxu0 %v2655_v43  ;;  %1297 = vmatprep.subr.bf16.mxu1 %v2656_v44  ;;  %v2733_v43 = vld [vmem:[#allocation5 + $0xec] ss:$16 sps:$4 sm:$0xff]   ;;  %v3233_v44 = vpack.c.bf16 %v94_v42, %v88_v41  ;;  %v2770_v10 = vld [vmem:[#allocation5 + $0x5c0] ss:$16 sps:$4 sm:$0xff]   ;;  %v2806_v41 = vld [vmem:[#allocation5 + $0x308] ss:$16 sps:$4 sm:$0xff]  }
  0x78   :  { %1340 = vmatprep.subr.bf16.mxu0 %v2658_v45  ;;  %v2728_v45 = vld [vmem:[#allocation5 + $0x4e0] ss:$16 sps:$4 sm:$0xff]   ;;  %v2811_v42 = vld [vmem:[#allocation5 + $0x32c] ss:$16 sps:$4 sm:$0xff]  }
  0x7a   :  { %1298 = vmatpush1.bf16.msra.mxu1 %v2660_v47  ;;  %v2736_v47 = vld [vmem:[#allocation5 + $0x504] ss:$16 sps:$4 sm:$0xff]  }
  0x7b   :  { %1341 = vmatpush1.bf16.msra.mxu0 %v2661_v48  ;;  %1299 = vmatprep.subr.bf16.mxu1 %v2662_v53  ;;  %v2739_v48 = vld [vmem:[#allocation5 + $0x10c] ss:$16 sps:$4 sm:$0xff]   ;;  %v2740_v53 = vld [vmem:[#allocation5 + $0x520] ss:$16 sps:$4 sm:$0xff]  }
  0x7c   :  { %1342 = vmatprep.subr.bf16.mxu0 %v2664_v54  ;;  %v2743_v54 = vld [vmem:[#allocation5 + $0x128] ss:$16 sps:$4 sm:$0xff]  }
  0x7e   :  { %1300 = vmatpush1.bf16.msra.mxu1 %v2666_v56  ;;  %v2748_v56 = vld [vmem:[#allocation5 + $0x544] ss:$16 sps:$4 sm:$0xff]  }
  0x7f   :  { %1343 = vmatpush1.bf16.msra.mxu0 %v2667_v57  ;;  %1301 = vmatprep.subr.bf16.mxu1 %v2668_v58  ;;  %v2751_v57 = vld [vmem:[#allocation5 + $0x14c] ss:$16 sps:$4 sm:$0xff]   ;;  %v2746_v58 = vld [vmem:[#allocation5 + $0x540] ss:$16 sps:$4 sm:$0xff]  }
  0x80   :  { %1344 = vmatprep.subr.bf16.mxu0 %v2670_v59  ;;  %v2749_v59 = vld [vmem:[#allocation5 + $0x148] ss:$16 sps:$4 sm:$0xff]  }
  0x82   :  { %1302 = vmatpush1.bf16.msra.mxu1 %v2672_v60  ;;  %v2754_v60 = vld [vmem:[#allocation5 + $0x564] ss:$16 sps:$4 sm:$0xff]  }
  0x83   :  { %1345 = vmatpush1.bf16.msra.mxu0 %v2673_v61  ;;  %1303 = vmatprep.subr.bf16.mxu1 %v2674_v62  ;;  %v2757_v61 = vld [vmem:[#allocation5 + $0x16c] ss:$16 sps:$4 sm:$0xff]   ;;  %v2752_v62 = vld [vmem:[#allocation5 + $0x560] ss:$16 sps:$4 sm:$0xff]  }
  0x84   :  { %1346 = vmatprep.subr.bf16.mxu0 %v2676_v63  ;;  %v2755_v63 = vld [vmem:[#allocation5 + $0x168] ss:$16 sps:$4 sm:$0xff]  }
  0x86   :  { %1304 = vmatpush1.bf16.msra.mxu1 %v2678_v0  ;;  %v2760_v0 = vld [vmem:[#allocation5 + $0x584] ss:$16 sps:$4 sm:$0xff]  }
  0x87   :  { %1347 = vmatpush1.bf16.msra.mxu0 %v2679_v1  ;;  %1305 = vmatprep.subr.bf16.mxu1 %v2680_v2  ;;  %v2763_v1 = vld [vmem:[#allocation5 + $0x18c] ss:$16 sps:$4 sm:$0xff]   ;;  %v2758_v2 = vld [vmem:[#allocation5 + $0x580] ss:$16 sps:$4 sm:$0xff]  }
  0x88   :  { %1348 = vmatprep.subr.bf16.mxu0 %v2682_v3  ;;  %v2761_v3 = vld [vmem:[#allocation5 + $0x188] ss:$16 sps:$4 sm:$0xff]  }
  0x8a   :  { %1306 = vmatpush1.bf16.msra.mxu1 %v2684_v4  ;;  %v2766_v4 = vld [vmem:[#allocation5 + $0x5a4] ss:$16 sps:$4 sm:$0xff]  }
  0x8b   :  { %1349 = vmatpush1.bf16.msra.mxu0 %v2685_v5  ;;  %1404 = vmatprep.subr.bf16.mxu1 %v2691_v11  ;;  %v2769_v5 = vld [vmem:[#allocation5 + $0x1ac] ss:$16 sps:$4 sm:$0xff]   ;;  %v2773_v11 = vld [vmem:[#allocation5 + $0x1c8] ss:$16 sps:$4 sm:$0xff]  }
  0x8c   :  { %1361 = vmatprep.subr.bf16.mxu0 %v2688_v8  ;;  %v2772_v8 = vld [vmem:[#allocation5 + $0x5c4] ss:$16 sps:$4 sm:$0xff]  }
  0x8d   :  { %1308 = vmatmul.mubr.bf16.vlgmr.msra.gmra.mrb[0].mxu1 %v3226_v12 }
  0x8e   :  { %1351 = vmatmul.mubr.bf16.vlgmr.msra.gmra.mrb[0].mxu0 %v3228_v15  ;;  %1405 = vmatpush1.bf16.msra.mxu1 %v2689_v14  ;;  %v2781_v14 = vld [vmem:[#allocation5 + $0x1ec] ss:$16 sps:$4 sm:$0xff]  }
  0x8f   :  { %1362 = vmatpush1.bf16.msra.mxu0 %v2686_v13  ;;  %1406 = vmatprep.subr.bf16.mxu1 %v2697_v17  ;;  %v2778_v13 = vld [vmem:[#allocation5 + $0x5e4] ss:$16 sps:$4 sm:$0xff]   ;;  %v2779_v17 = vld [vmem:[#allocation5 + $0x1e8] ss:$16 sps:$4 sm:$0xff]  }
  0x90   :  { %1363 = vmatprep.subr.bf16.mxu0 %v2694_v16  ;;  %1436 = vmatprep.mubr.bf16.mxu1 %v3220_v50  ;;  %v2737_v50 = vld [vmem:[#allocation5 + $0x108] ss:$16 sps:$4 sm:$0xff]   ;;  %v2776_v16 = vld [vmem:[#allocation5 + $0x5e0] ss:$16 sps:$4 sm:$0xff]  }
  0x91   :  { %1393 = vmatprep.mubr.bf16.mxu0 %v3233_v44 }
  0x92   :  { %1407 = vmatpush1.bf16.msra.mxu1 %v2695_v19  ;;  %v93_v19 = vld [vmem:[#allocation2 + $0x50] sm:$0xff] }
  0x93   :  { %1364 = vmatpush1.bf16.msra.mxu0 %v2692_v18  ;;  %1408 = vmatprep.subr.bf16.mxu1 %v2703_v21  ;;  %v87_v18 = vld [vmem:[#allocation2 + $0x20] sm:$0xff] }
  0x94   :  { %1365 = vmatprep.subr.bf16.mxu0 %v2700_v20  ;;  %v2784_v20 = vld [vmem:[#allocation5 + $0x20c] ss:$16 sps:$4 sm:$0xff]   ;;  %v3236_v21 = vpack.c.bf16 %v93_v19, %v87_v18  ;;  %v2911_v19 = vld [vmem:[#allocation7 + $0xb0] ss:$8 sps:$4 sm:$0xff]  }
  0x95   :  { %v2838_v18 = vld [vmem:[#allocation5 + $0x44c] ss:$16 sps:$4 sm:$0xff]  }
  0x96   :  { %1409 = vmatpush1.bf16.msra.mxu1 %v2701_v23  ;;  %v2787_v23 = vld [vmem:[#allocation5 + $0x22c] ss:$16 sps:$4 sm:$0xff]  }
  0x97   :  { %1366 = vmatpush1.bf16.msra.mxu0 %v2698_v22  ;;  %1410 = vmatprep.subr.bf16.mxu1 %v2709_v25  ;;  %v2782_v22 = vld [vmem:[#allocation5 + $0x208] ss:$16 sps:$4 sm:$0xff]   ;;  %v2790_v25 = vld [vmem:[#allocation5 + $0x24c] ss:$16 sps:$4 sm:$0xff]  }
  0x98   :  { %1367 = vmatprep.subr.bf16.mxu0 %v2706_v24  ;;  %v2785_v24 = vld [vmem:[#allocation5 + $0x228] ss:$16 sps:$4 sm:$0xff]  }
  0x9a   :  { %1411 = vmatpush1.bf16.msra.mxu1 %v2707_v27  ;;  %v2793_v27 = vld [vmem:[#allocation5 + $0x26c] ss:$16 sps:$4 sm:$0xff]  }
  0x9b   :  { %1368 = vmatpush1.bf16.msra.mxu0 %v2704_v26  ;;  %1412 = vmatprep.subr.bf16.mxu1 %v2715_v29  ;;  %v2788_v26 = vld [vmem:[#allocation5 + $0x248] ss:$16 sps:$4 sm:$0xff]   ;;  %v2796_v29 = vld [vmem:[#allocation5 + $0x28c] ss:$16 sps:$4 sm:$0xff]  }
  0x9c   :  { %1369 = vmatprep.subr.bf16.mxu0 %v2712_v28  ;;  %v2791_v28 = vld [vmem:[#allocation5 + $0x268] ss:$16 sps:$4 sm:$0xff]  }
  0x9e   :  { %1413 = vmatpush1.bf16.msra.mxu1 %v2713_v31  ;;  %v2799_v31 = vld [vmem:[#allocation5 + $0x2ac] ss:$16 sps:$4 sm:$0xff]  }
  0x9f   :  { %1370 = vmatpush1.bf16.msra.mxu0 %v2710_v30  ;;  %1414 = vmatprep.subr.bf16.mxu1 %v2721_v33  ;;  %v2794_v30 = vld [vmem:[#allocation5 + $0x288] ss:$16 sps:$4 sm:$0xff]  }
  0xa0   :  { %1371 = vmatprep.subr.bf16.mxu0 %v2718_v32  ;;  %v2797_v32 = vld [vmem:[#allocation5 + $0x2a8] ss:$16 sps:$4 sm:$0xff]  }
  0xa1   :  { %v2800_v33 = vld [vmem:[#allocation5 + $0x2c8] ss:$16 sps:$4 sm:$0xff]  }
  0xa2   :  { %1415 = vmatpush1.bf16.msra.mxu1 %v2719_v35  ;;  %v2880_v35 = vld [vmem:[#allocation7 + $0x4] ss:$8 sps:$4 sm:$0xff]  }
  0xa3   :  { %1372 = vmatpush1.bf16.msra.mxu0 %v2716_v34  ;;  %1416 = vmatprep.subr.bf16.mxu1 %v2727_v37  ;;  %v2805_v34 = vld [vmem:[#allocation5 + $0x2ec] ss:$16 sps:$4 sm:$0xff]   ;;  %v2803_v37 = vld [vmem:[#allocation5 + $0x2e8] ss:$16 sps:$4 sm:$0xff]  }
  0xa4   :  { %1373 = vmatprep.subr.bf16.mxu0 %v2724_v36  ;;  %v2883_v36 = vld [vmem:[#allocation7 + $0x14] ss:$8 sps:$4 sm:$0xff]  }
  0xa6   :  { %1417 = vmatpush1.bf16.msra.mxu1 %v2725_v39  ;;  %v2881_v39 = vld [vmem:[#allocation7 + $0x10] ss:$8 sps:$4 sm:$0xff]  }
  0xa7   :  { %1374 = vmatpush1.bf16.msra.mxu0 %v2722_v38  ;;  %1418 = vmatprep.subr.bf16.mxu1 %v2733_v43  ;;  %v2808_v38 = vld [vmem:[#allocation5 + $0x30c] ss:$16 sps:$4 sm:$0xff]   ;;  %v2884_v43 = vld [vmem:[#allocation7 + $0x20] ss:$8 sps:$4 sm:$0xff]  }
  0xa8   :  { %1375 = vmatprep.subr.bf16.mxu0 %v2730_v40  ;;  %v2886_v40 = vld [vmem:[#allocation7 + $0x24] ss:$8 sps:$4 sm:$0xff]  }
  0xaa   :  { %1419 = vmatpush1.bf16.msra.mxu1 %v2731_v46  ;;  %v2889_v46 = vld [vmem:[#allocation7 + $0x34] ss:$8 sps:$4 sm:$0xff]  }
  0xab   :  { %1376 = vmatpush1.bf16.msra.mxu0 %v2728_v45  ;;  %1420 = vmatprep.subr.bf16.mxu1 %v2739_v48  ;;  %v2809_v45 = vld [vmem:[#allocation5 + $0x328] ss:$16 sps:$4 sm:$0xff]  }
  0xac   :  { %1377 = vmatprep.subr.bf16.mxu0 %v2736_v47  ;;  %v2814_v47 = vld [vmem:[#allocation5 + $0x34c] ss:$16 sps:$4 sm:$0xff]   ;;  %v2887_v48 = vld [vmem:[#allocation7 + $0x30] ss:$8 sps:$4 sm:$0xff]  }
  0xae   :  { %1421 = vmatpush1.bf16.msra.mxu1 %v2737_v50  ;;  %v2812_v50 = vld [vmem:[#allocation5 + $0x348] ss:$16 sps:$4 sm:$0xff]  }
  0xaf   :  { %1378 = vmatpush1.bf16.msra.mxu0 %v2734_v49  ;;  %1422 = vmatprep.subr.bf16.mxu1 %v2745_v52  ;;  %v2892_v49 = vld [vmem:[#allocation7 + $0x44] ss:$8 sps:$4 sm:$0xff]   ;;  %v2890_v52 = vld [vmem:[#allocation7 + $0x40] ss:$8 sps:$4 sm:$0xff]  }
  0xb0   :  { %1379 = vmatprep.subr.bf16.mxu0 %v2742_v51  ;;  %v2817_v51 = vld [vmem:[#allocation5 + $0x36c] ss:$16 sps:$4 sm:$0xff]  }
  0xb2   :  { %1423 = vmatpush1.bf16.msra.mxu1 %v2743_v54  ;;  %v2815_v54 = vld [vmem:[#allocation5 + $0x368] ss:$16 sps:$4 sm:$0xff]  }
  0xb3   :  { %1380 = vmatpush1.bf16.msra.mxu0 %v2740_v53  ;;  %1424 = vmatprep.subr.bf16.mxu1 %v2751_v57  ;;  %v2895_v53 = vld [vmem:[#allocation7 + $0x54] ss:$8 sps:$4 sm:$0xff]   ;;  %v2893_v57 = vld [vmem:[#allocation7 + $0x50] ss:$8 sps:$4 sm:$0xff]  }
  0xb4   :  { %1381 = vmatprep.subr.bf16.mxu0 %v2748_v56  ;;  %v2820_v56 = vld [vmem:[#allocation5 + $0x38c] ss:$16 sps:$4 sm:$0xff]  }
  0xb6   :  { %1425 = vmatpush1.bf16.msra.mxu1 %v2749_v59  ;;  %v2818_v59 = vld [vmem:[#allocation5 + $0x388] ss:$16 sps:$4 sm:$0xff]  }
  0xb7   :  { %1382 = vmatpush1.bf16.msra.mxu0 %v2746_v58  ;;  %1426 = vmatprep.subr.bf16.mxu1 %v2757_v61  ;;  %v2898_v58 = vld [vmem:[#allocation7 + $0x64] ss:$8 sps:$4 sm:$0xff]   ;;  %v2896_v61 = vld [vmem:[#allocation7 + $0x60] ss:$8 sps:$4 sm:$0xff]  }
  0xb8   :  { %1383 = vmatprep.subr.bf16.mxu0 %v2754_v60  ;;  %v2823_v60 = vld [vmem:[#allocation5 + $0x3ac] ss:$16 sps:$4 sm:$0xff]  }
  0xba   :  { %1427 = vmatpush1.bf16.msra.mxu1 %v2755_v63  ;;  %v2821_v63 = vld [vmem:[#allocation5 + $0x3a8] ss:$16 sps:$4 sm:$0xff]  }
  0xbb   :  { %1384 = vmatpush1.bf16.msra.mxu0 %v2752_v62  ;;  %1428 = vmatprep.subr.bf16.mxu1 %v2763_v1  ;;  %v2901_v62 = vld [vmem:[#allocation7 + $0x74] ss:$8 sps:$4 sm:$0xff]   ;;  %v2899_v1 = vld [vmem:[#allocation7 + $0x70] ss:$8 sps:$4 sm:$0xff]  }
  0xbc   :  { %1385 = vmatprep.subr.bf16.mxu0 %v2760_v0  ;;  %v2826_v0 = vld [vmem:[#allocation5 + $0x3cc] ss:$16 sps:$4 sm:$0xff]  }
  0xbe   :  { %1429 = vmatpush1.bf16.msra.mxu1 %v2761_v3  ;;  %v2824_v3 = vld [vmem:[#allocation5 + $0x3c8] ss:$16 sps:$4 sm:$0xff]  }
  0xbf   :  { %1386 = vmatpush1.bf16.msra.mxu0 %v2758_v2  ;;  %1430 = vmatprep.subr.bf16.mxu1 %v2769_v5  ;;  %v2904_v2 = vld [vmem:[#allocation7 + $0x84] ss:$8 sps:$4 sm:$0xff]   ;;  %v2902_v5 = vld [vmem:[#allocation7 + $0x80] ss:$8 sps:$4 sm:$0xff]  }
  0xc0   :  { %1387 = vmatprep.subr.bf16.mxu0 %v2766_v4  ;;  %v2829_v4 = vld [vmem:[#allocation5 + $0x3ec] ss:$16 sps:$4 sm:$0xff]  }
  0xc2   :  { %1431 = vmatpush1.bf16.msra.mxu1 %v2767_v7  ;;  %v2827_v7 = vld [vmem:[#allocation5 + $0x3e8] ss:$16 sps:$4 sm:$0xff]  }
  0xc3   :  { %1388 = vmatpush1.bf16.msra.mxu0 %v2764_v6  ;;  %1432 = vmatprep.subr.bf16.mxu1 %v2775_v9  ;;  %v2907_v6 = vld [vmem:[#allocation7 + $0x94] ss:$8 sps:$4 sm:$0xff]   ;;  %v2905_v9 = vld [vmem:[#allocation7 + $0x90] ss:$8 sps:$4 sm:$0xff]  }
  0xc4   :  { %1389 = vmatprep.subr.bf16.mxu0 %v2772_v8  ;;  %v2832_v8 = vld [vmem:[#allocation5 + $0x40c] ss:$16 sps:$4 sm:$0xff]  }
  0xc6   :  { %1433 = vmatpush1.bf16.msra.mxu1 %v2773_v11  ;;  %v2830_v11 = vld [vmem:[#allocation5 + $0x408] ss:$16 sps:$4 sm:$0xff]  }
  0xc7   :  { %1390 = vmatpush1.bf16.msra.mxu0 %v2770_v10  ;;  %1434 = vmatprep.subr.bf16.mxu1 %v2781_v14  ;;  %v2910_v10 = vld [vmem:[#allocation7 + $0xa4] ss:$8 sps:$4 sm:$0xff]   ;;  %v2908_v14 = vld [vmem:[#allocation7 + $0xa0] ss:$8 sps:$4 sm:$0xff]  }
  0xc8   :  { %1391 = vmatprep.subr.bf16.mxu0 %v2778_v13  ;;  %v2835_v13 = vld [vmem:[#allocation5 + $0x42c] ss:$16 sps:$4 sm:$0xff]  }
  0xca   :  { %1435 = vmatpush1.bf16.msra.mxu1 %v2779_v17  ;;  %v2833_v17 = vld [vmem:[#allocation5 + $0x428] ss:$16 sps:$4 sm:$0xff]  }
  0xcb   :  { %1392 = vmatpush1.bf16.msra.mxu0 %v2776_v16  ;;  %1447 = vmatprep.subr.bf16.mxu1 %v2784_v20  ;;  %v2913_v16 = vld [vmem:[#allocation7 + $0xb4] ss:$8 sps:$4 sm:$0xff]   ;;  %v2916_v20 = vld [vmem:[#allocation7 + $0xc4] ss:$8 sps:$4 sm:$0xff]  }
  0xcc   :  { %1941 = vmatprep.subr.bf16.mxu0 %v2880_v35  ;;  %v2923_v35 = vld [vmem:[#allocation7 + $0xf0] ss:$8 sps:$4 sm:$0xff]  }
  0xcd   :  { %1437 = vmatmul.mubr.bf16.vlgmr.msra.gmra.mrb[4].mxu1 %v3226_v12  ;;  %v2802_v12 = vld [vmem:[#allocation5 + $0x2cc] ss:$16 sps:$4 sm:$0xff]  }
  0xce   :  { %1394 = vmatmul.mubr.bf16.vlgmr.msra.gmra.mrb[0].mxu0 %v3236_v21  ;;  %1448 = vmatpush1.bf16.msra.mxu1 %v2782_v22  ;;  %v2836_v22 = vld [vmem:[#allocation5 + $0x448] ss:$16 sps:$4 sm:$0xff]  }
  0xcf   :  { %1479 = vmatprep.mubr.bf16.mxu1 %v3222_v55  ;;  %1449 = vmatprep.subr.bf16.mxu1 %v2787_v23  ;;  %v2878_v55 = vld [vmem:[#allocation7] ss:$8 sps:$4 sm:$0xff]   ;;  %v2841_v23 = vld [vmem:[#allocation5 + $0x46c] ss:$16 sps:$4 sm:$0xff]  }
  0xd0   :  { %1942 = vmatpush1.bf16.msra.mxu0 %v2878_v55  ;;  %v2851_v55 = vld [vmem:[#allocation5 + $0x4e8] ss:$16 sps:$4 sm:$0xff]  }
  0xd1   :  { %1943 = vmatprep.subr.bf16.mxu0 %v2883_v36  ;;  %v2856_v36 = vld [vmem:[#allocation5 + $0x50c] ss:$16 sps:$4 sm:$0xff]  }
  0xd2   :  { %1450 = vmatpush1.bf16.msra.mxu1 %v2785_v24  ;;  %v2914_v24 = vld [vmem:[#allocation7 + $0xc0] ss:$8 sps:$4 sm:$0xff]  }
  0xd3   :  { %1451 = vmatprep.subr.bf16.mxu1 %v2790_v25  ;;  %v2919_v25 = vld [vmem:[#allocation7 + $0xd4] ss:$8 sps:$4 sm:$0xff]  }
  0xd4   :  { %1944 = vmatpush1.bf16.msra.mxu0 %v2881_v39  ;;  %v2928_v39 = vld [vmem:[#allocation7 + $0x104] ss:$8 sps:$4 sm:$0xff]  }
  0xd5   :  { %1945 = vmatprep.subr.bf16.mxu0 %v2886_v40  ;;  %v2857_v40 = vld [vmem:[#allocation5 + $0x528] ss:$16 sps:$4 sm:$0xff]  }
  0xd6   :  { %1452 = vmatpush1.bf16.msra.mxu1 %v2788_v26  ;;  %v2844_v26 = vld [vmem:[#allocation5 + $0x48c] ss:$16 sps:$4 sm:$0xff]  }
  0xd7   :  { %1453 = vmatprep.subr.bf16.mxu1 %v2793_v27  ;;  %v2842_v27 = vld [vmem:[#allocation5 + $0x488] ss:$16 sps:$4 sm:$0xff]  }
  0xd8   :  { %1946 = vmatpush1.bf16.msra.mxu0 %v2884_v43  ;;  %v2865_v43 = vld [vmem:[#allocation5 + $0x56c] ss:$16 sps:$4 sm:$0xff]  }
  0xd9   :  { %1947 = vmatprep.subr.bf16.mxu0 %v2889_v46  ;;  %v2868_v46 = vld [vmem:[#allocation5 + $0x58c] ss:$16 sps:$4 sm:$0xff]  }
  0xda   :  { %1454 = vmatpush1.bf16.msra.mxu1 %v2791_v28  ;;  %v2847_v28 = vld [vmem:[#allocation5 + $0x4ac] ss:$16 sps:$4 sm:$0xff]  }
  0xdb   :  { %1455 = vmatprep.subr.bf16.mxu1 %v2796_v29  ;;  %v2845_v29 = vld [vmem:[#allocation5 + $0x4a8] ss:$16 sps:$4 sm:$0xff]  }
  0xdc   :  { %1948 = vmatpush1.bf16.msra.mxu0 %v2887_v48  ;;  %v2871_v48 = vld [vmem:[#allocation5 + $0x5ac] ss:$16 sps:$4 sm:$0xff]  }
  0xdd   :  { %1949 = vmatprep.subr.bf16.mxu0 %v2892_v49  ;;  %v2869_v49 = vld [vmem:[#allocation5 + $0x5a8] ss:$16 sps:$4 sm:$0xff]  }
  0xde   :  { %1456 = vmatpush1.bf16.msra.mxu1 %v2794_v30  ;;  %v2850_v30 = vld [vmem:[#allocation5 + $0x4cc] ss:$16 sps:$4 sm:$0xff]  }
  0xdf   :  { %1457 = vmatprep.subr.bf16.mxu1 %v2799_v31  ;;  %v2922_v31 = vld [vmem:[#allocation7 + $0xe4] ss:$8 sps:$4 sm:$0xff]  }
  0xe0   :  { %1950 = vmatpush1.bf16.msra.mxu0 %v2890_v52  ;;  %v2877_v52 = vld [vmem:[#allocation5 + $0x5ec] ss:$16 sps:$4 sm:$0xff]  }
  0xe1   :  { %1951 = vmatprep.subr.bf16.mxu0 %v2895_v53  ;;  %v2875_v53 = vld [vmem:[#allocation5 + $0x5e8] ss:$16 sps:$4 sm:$0xff]  }
  0xe2   :  { %1458 = vmatpush1.bf16.msra.mxu1 %v2797_v32  ;;  %v2848_v32 = vld [vmem:[#allocation5 + $0x4c8] ss:$16 sps:$4 sm:$0xff]  }
  0xe3   :  { %1459 = vmatprep.subr.bf16.mxu1 %v2802_v12  ;;  %v2920_v12 = vld [vmem:[#allocation7 + $0xe0] ss:$8 sps:$4 sm:$0xff]  }
  0xe4   :  { %1952 = vmatpush1.bf16.msra.mxu0 %v2893_v57 }
  0xe5   :  { %1953 = vmatprep.subr.bf16.mxu0 %v2898_v58 }
  0xe6   :  { %1460 = vmatpush1.bf16.msra.mxu1 %v2800_v33  ;;  %v2853_v33 = vld [vmem:[#allocation5 + $0x4ec] ss:$16 sps:$4 sm:$0xff]  }
  0xe7   :  { %1461 = vmatprep.subr.bf16.mxu1 %v2805_v34  ;;  %v2925_v34 = vld [vmem:[#allocation7 + $0xf4] ss:$8 sps:$4 sm:$0xff]  }
  0xe8   :  { %1954 = vmatpush1.bf16.msra.mxu0 %v2896_v61 }
  0xe9   :  { %1955 = vmatprep.subr.bf16.mxu0 %v2901_v62  ;;  %v3250_v62 = vld [vmem:[%s3290_s2] sm:$0xf] }
  0xea   :  { %1462 = vmatpush1.bf16.msra.mxu1 %v2803_v37  ;;  %v2854_v37 = vld [vmem:[#allocation5 + $0x508] ss:$16 sps:$4 sm:$0xff]  }
  0xeb   :  { %1463 = vmatprep.subr.bf16.mxu1 %v2808_v38  ;;  %v2859_v38 = vld [vmem:[#allocation5 + $0x52c] ss:$16 sps:$4 sm:$0xff]  }
  0xec   :  { %1956 = vmatpush1.bf16.msra.mxu0 %v2899_v1 }
  0xed   :  { %1957 = vmatprep.subr.bf16.mxu0 %v2904_v2 }
  0xee   :  { %1464 = vmatpush1.bf16.msra.mxu1 %v2806_v41  ;;  %v2862_v41 = vld [vmem:[#allocation5 + $0x54c] ss:$16 sps:$4 sm:$0xff]  }
  0xef   :  { %1465 = vmatprep.subr.bf16.mxu1 %v2811_v42  ;;  %v2860_v42 = vld [vmem:[#allocation5 + $0x548] ss:$16 sps:$4 sm:$0xff]  }
  0xf0   :  { %1958 = vmatpush1.bf16.msra.mxu0 %v2902_v5 }
  0xf1   :  { %1959 = vmatprep.subr.bf16.mxu0 %v2907_v6 }
  0xf2   :  { %1466 = vmatpush1.bf16.msra.mxu1 %v2809_v45  ;;  %v2863_v45 = vld [vmem:[#allocation5 + $0x568] ss:$16 sps:$4 sm:$0xff]  }
  0xf3   :  { %1467 = vmatprep.subr.bf16.mxu1 %v2814_v47  ;;  %v2866_v47 = vld [vmem:[#allocation5 + $0x588] ss:$16 sps:$4 sm:$0xff]  }
  0xf4   :  { %1960 = vmatpush1.bf16.msra.mxu0 %v2905_v9 }
  0xf5   :  { %1961 = vmatprep.subr.bf16.mxu0 %v2910_v10 }
  0xf6   :  { %1468 = vmatpush1.bf16.msra.mxu1 %v2812_v50  ;;  %v2874_v50 = vld [vmem:[#allocation5 + $0x5cc] ss:$16 sps:$4 sm:$0xff]  }
  0xf7   :  { %1469 = vmatprep.subr.bf16.mxu1 %v2817_v51  ;;  %v2872_v51 = vld [vmem:[#allocation5 + $0x5c8] ss:$16 sps:$4 sm:$0xff]  }
  0xf8   :  { %1962 = vmatpush1.bf16.msra.mxu0 %v2908_v14 }
  0xf9   :  { %1963 = vmatprep.subr.bf16.mxu0 %v2913_v16 }
  0xfa   :  { %1470 = vmatpush1.bf16.msra.mxu1 %v2815_v54 }
  0xfb   :  { %1471 = vmatprep.subr.bf16.mxu1 %v2820_v56 }
  0xfc   :  { %1964 = vmatpush1.bf16.msra.mxu0 %v2911_v19 }
  0xfd   :  { %1965 = vmatprep.subr.bf16.mxu0 %v2916_v20 }
  0xfe   :  { %1472 = vmatpush1.bf16.msra.mxu1 %v2818_v59  ;;  %v295_v59 = vlaneseq }
  0xff   :  { %1473 = vmatprep.subr.bf16.mxu1 %v2823_v60 }
 0x100   :  { %1966 = vmatpush1.bf16.msra.mxu0 %v2914_v24  ;;  %v3244_v60 = vshrl.u32 %v295_v59, 7  ;;  %v2974_v24 = vld [vmem:[#allocation8 + $0x40] sm:$0xff]  }
 0x101   :  { %1967 = vmatprep.subr.bf16.mxu0 %v2919_v25  ;;  %v2975_v25 = vld [vmem:[#allocation8] sm:$0xff]  }
 0x102   :  { %1474 = vmatpush1.bf16.msra.mxu1 %v2821_v63  ;;  %v297_v61 = vsub.s32 0, %v3244_v60  ;;  %v301_v63 = vsub.s32 1, %v3244_v60  ;;  %v2968_v59 = vld [vmem:[#allocation7 + $0x1e0] ss:$8 sps:$4 sm:$0xff]  }
 0x103   :  { %1475 = vmatprep.subr.bf16.mxu1 %v2826_v0 }
 0x104   :  { %v302_v0 = vrot.slane %v3250_v62, %v301_v63 }
 0x106   :  { %1476 = vmatpush1.bf16.msra.mxu1 %v2824_v3 }
 0x107   :  { %1477 = vmatprep.subr.bf16.mxu1 %v2829_v4 }
 0x10a   :  { %1478 = vmatpush1.bf16.msra.mxu1 %v2827_v7 }
 0x10b   :  { %1490 = vmatprep.subr.bf16.mxu1 %v2832_v8 }
 0x10d   :  { %1480 = vmatmul.mubr.bf16.vlgmr.msra.gmra.mrb[4].mxu1 %v3228_v15  ;;  %v2839_v15 = vld [vmem:[#allocation5 + $0x468] ss:$16 sps:$4 sm:$0xff]  }
 0x10e   :  { %1491 = vmatpush1.bf16.msra.mxu1 %v2830_v11  ;;  %1522 = vmatprep.mubr.bf16.mxu1 %v3233_v44  ;;  %v2917_v44 = vld [vmem:[#allocation7 + $0xd0] ss:$8 sps:$4 sm:$0xff]  }
 0x10f   :  { %1492 = vmatprep.subr.bf16.mxu1 %v2835_v13  ;;  %1968 = vmatpush1.bf16.msra.mxu0 %v2917_v44  ;;  %v2934_v44 = vld [vmem:[#allocation7 + $0x124] ss:$8 sps:$4 sm:$0xff]  }
 0x110   :  { %1969 = vmatprep.subr.bf16.mxu0 %v2922_v31  ;;  %v2979_v31 = vld [vmem:[#allocation8 + $0x10] sm:$0xff]  }
 0x112   :  { %1493 = vmatpush1.bf16.msra.mxu1 %v2833_v17 }
 0x113   :  { %1494 = vmatprep.subr.bf16.mxu1 %v2838_v18  ;;  %1970 = vmatpush1.bf16.msra.mxu0 %v2920_v12  ;;  %v2935_v12 = vld [vmem:[#allocation7 + $0x130] ss:$8 sps:$4 sm:$0xff]  }
 0x114   :  { %1971 = vmatprep.subr.bf16.mxu0 %v2925_v34  ;;  %v2981_v34 = vld [vmem:[#allocation8 + $0x18] sm:$0xff]  }
 0x116   :  { %1495 = vmatpush1.bf16.msra.mxu1 %v2836_v22  ;;  %v2926_v22 = vld [vmem:[#allocation7 + $0x100] ss:$8 sps:$4 sm:$0xff]  }
 0x117   :  { %1496 = vmatprep.subr.bf16.mxu1 %v2841_v23  ;;  %1972 = vmatpush1.bf16.msra.mxu0 %v2923_v35  ;;  %v2931_v23 = vld [vmem:[#allocation7 + $0x114] ss:$8 sps:$4 sm:$0xff]   ;;  %v2938_v35 = vld [vmem:[#allocation7 + $0x140] ss:$8 sps:$4 sm:$0xff]  }
 0x118   :  { %1984 = vmatprep.subr.bf16.mxu0 %v2928_v39  ;;  %v2941_v39 = vld [vmem:[#allocation7 + $0x150] ss:$8 sps:$4 sm:$0xff]  }
 0x11a   :  { %1497 = vmatpush1.bf16.msra.mxu1 %v2839_v15  ;;  %v2976_v15 = vld [vmem:[#allocation8 + $0x48] sm:$0xff]  }
 0x11b   :  { %1498 = vmatprep.subr.bf16.mxu1 %v2844_v26  ;;  %v2929_v26 = vld [vmem:[#allocation7 + $0x110] ss:$8 sps:$4 sm:$0xff]  }
 0x11e   :  { %1499 = vmatpush1.bf16.msra.mxu1 %v2842_v27  ;;  %v2977_v27 = vld [vmem:[#allocation8 + $0x8] sm:$0xff]  }
 0x11f   :  { %1500 = vmatprep.subr.bf16.mxu1 %v2847_v28  ;;  %v2978_v28 = vld [vmem:[#allocation8 + $0x50] sm:$0xff]  }
 0x122   :  { %1501 = vmatpush1.bf16.msra.mxu1 %v2845_v29  ;;  %v2932_v29 = vld [vmem:[#allocation7 + $0x120] ss:$8 sps:$4 sm:$0xff]  }
 0x123   :  { %1502 = vmatprep.subr.bf16.mxu1 %v2850_v30  ;;  %v2937_v30 = vld [vmem:[#allocation7 + $0x134] ss:$8 sps:$4 sm:$0xff]  }
 0x126   :  { %1503 = vmatpush1.bf16.msra.mxu1 %v2848_v32  ;;  %v2980_v32 = vld [vmem:[#allocation8 + $0x58] sm:$0xff]  }
 0x127   :  { %1504 = vmatprep.subr.bf16.mxu1 %v2853_v33  ;;  %v2940_v33 = vld [vmem:[#allocation7 + $0x144] ss:$8 sps:$4 sm:$0xff]  }
 0x12a   :  { %1505 = vmatpush1.bf16.msra.mxu1 %v2851_v55  ;;  %v2982_v55 = vld [vmem:[#allocation8 + $0x60] sm:$0xff]  }
 0x12b   :  { %1506 = vmatprep.subr.bf16.mxu1 %v2856_v36  ;;  %v2943_v36 = vld [vmem:[#allocation7 + $0x154] ss:$8 sps:$4 sm:$0xff]  }
 0x12e   :  { %1507 = vmatpush1.bf16.msra.mxu1 %v2854_v37  ;;  %v2983_v37 = vld [vmem:[#allocation8 + $0x20] sm:$0xff]  }
 0x12f   :  { %1508 = vmatprep.subr.bf16.mxu1 %v2859_v38  ;;  %v2984_v38 = vld [vmem:[#allocation8 + $0x68] sm:$0xff]  }
 0x132   :  { %1509 = vmatpush1.bf16.msra.mxu1 %v2857_v40  ;;  %v2946_v40 = vld [vmem:[#allocation7 + $0x164] ss:$8 sps:$4 sm:$0xff]  }
 0x133   :  { %1510 = vmatprep.subr.bf16.mxu1 %v2862_v41  ;;  %v2944_v41 = vld [vmem:[#allocation7 + $0x160] ss:$8 sps:$4 sm:$0xff]  }
 0x136   :  { %1511 = vmatpush1.bf16.msra.mxu1 %v2860_v42  ;;  %v2949_v42 = vld [vmem:[#allocation7 + $0x174] ss:$8 sps:$4 sm:$0xff]  }
 0x137   :  { %1512 = vmatprep.subr.bf16.mxu1 %v2865_v43  ;;  %v2947_v43 = vld [vmem:[#allocation7 + $0x170] ss:$8 sps:$4 sm:$0xff]  }
 0x13a   :  { %1513 = vmatpush1.bf16.msra.mxu1 %v2863_v45  ;;  %v2952_v45 = vld [vmem:[#allocation7 + $0x184] ss:$8 sps:$4 sm:$0xff]  }
 0x13b   :  { %1514 = vmatprep.subr.bf16.mxu1 %v2868_v46  ;;  %v2950_v46 = vld [vmem:[#allocation7 + $0x180] ss:$8 sps:$4 sm:$0xff]  }
 0x13e   :  { %1515 = vmatpush1.bf16.msra.mxu1 %v2866_v47  ;;  %v2955_v47 = vld [vmem:[#allocation7 + $0x194] ss:$8 sps:$4 sm:$0xff]  }
 0x13f   :  { %1516 = vmatprep.subr.bf16.mxu1 %v2871_v48  ;;  %v2953_v48 = vld [vmem:[#allocation7 + $0x190] ss:$8 sps:$4 sm:$0xff]  }
 0x142   :  { %1517 = vmatpush1.bf16.msra.mxu1 %v2869_v49  ;;  %v2958_v49 = vld [vmem:[#allocation7 + $0x1a4] ss:$8 sps:$4 sm:$0xff]  }
 0x143   :  { %1518 = vmatprep.subr.bf16.mxu1 %v2874_v50  ;;  %v2956_v50 = vld [vmem:[#allocation7 + $0x1a0] ss:$8 sps:$4 sm:$0xff]  }
 0x146   :  { %1519 = vmatpush1.bf16.msra.mxu1 %v2872_v51  ;;  %v2961_v51 = vld [vmem:[#allocation7 + $0x1b4] ss:$8 sps:$4 sm:$0xff]  }
 0x147   :  { %1520 = vmatprep.subr.bf16.mxu1 %v2877_v52  ;;  %v2959_v52 = vld [vmem:[#allocation7 + $0x1b0] ss:$8 sps:$4 sm:$0xff]  }
 0x14a   :  { %1521 = vmatpush1.bf16.msra.mxu1 %v2875_v53  ;;  %v2964_v53 = vld [vmem:[#allocation7 + $0x1c4] ss:$8 sps:$4 sm:$0xff]  }
 0x14b   :  { %2523 = vmatprep.subr.bf16.mxu1 %v2974_v24  ;;  %v2988_v24 = vld [vmem:[#allocation8 + $0x78] sm:$0xff]  }
 0x14d   :  { %1523 = vmatmul.mubr.bf16.vlgmr.msra.gmra.mrb[4].mxu1 %v3236_v21  ;;  %v298_v21 = vrot.slane %v3250_v62, %v297_v61 }
 0x14e   :  { %2524 = vmatpush3.bf16.msra.mxu1 %v2975_v25  ;;  %v2989_v25 = vld [vmem:[#allocation8 + $0x38] sm:$0xff]  }
 0x14f   :  { %2525 = vmatprep.subr.bf16.mxu1 %v2976_v15  ;;  %v1609_v15 = vld [vmem:[%s3292_s4] sm:$0x3] }
 0x152   :  { %2526 = vmatpush3.bf16.msra.mxu1 %v2977_v27 }
 0x153   :  { %2527 = vmatprep.subr.bf16.mxu1 %v2978_v28 }
 0x156   :  { %2528 = vmatpush3.bf16.msra.mxu1 %v2979_v31 }
 0x157   :  { %2529 = vmatprep.subr.bf16.mxu1 %v2980_v32 }
 0x15a   :  { %2530 = vmatpush3.bf16.msra.mxu1 %v2981_v34 }
 0x15b   :  { %2531 = vmatprep.subr.bf16.mxu1 %v2982_v55 }
 0x15e   :  { %2532 = vmatpush3.bf16.msra.mxu1 %v2983_v37 }
 0x15f   :  { %2533 = vmatprep.subr.bf16.mxu1 %v2984_v38 }
 0x160   :  { %v1309_v54 = vpop.f32.mrb[0].mxu1 }
 0x161   :  { %v1311_v56 = vpop.f32.mrb[1].mxu1  ;;  %v1310_v1 = vadd.f32 %v1309_v54, %v298_v21  ;;  %v2962_v54 = vld [vmem:[#allocation7 + $0x1c0] ss:$8 sps:$4 sm:$0xff]  }
 0x162   :  { %v1313_v57 = vpop.f32.mrb[2].mxu1  ;;  %v1312_v2 = vadd.f32 %v1311_v56, %v302_v0  ;;  %v2967_v56 = vld [vmem:[#allocation7 + $0x1d4] ss:$8 sps:$4 sm:$0xff]  }
 0x163   :  { %v1315_v58 = vpop.f32.mrb[3].mxu1  ;;  %v1314_v4 = vadd.f32 %v1313_v57, %v298_v21  ;;  %v2965_v57 = vld [vmem:[#allocation7 + $0x1d0] ss:$8 sps:$4 sm:$0xff]   ;;  %v2973_v21 = vld [vmem:[#allocation7 + $0x1f4] ss:$8 sps:$4 sm:$0xff]  }
 0x164   :  { %v1316_v7 = vadd.f32 %v1315_v58, %v302_v0  ;;  %v2970_v58 = vld [vmem:[#allocation7 + $0x1e4] ss:$8 sps:$4 sm:$0xff]   ;;  %v2971_v0 = vld [vmem:[#allocation7 + $0x1f0] ss:$8 sps:$4 sm:$0xff]  }
 0x1a1   :  { %v1395_v3 = vpop.f32.mrb[0].mxu0 }
 0x1a2   :  { %v2546_v5 = vadd.f32 %v1395_v3, %v1310_v1  ;;  %v1397_v6 = vpop.f32.mrb[1].mxu0  ;;  %v305_v1 = vsub.s32 2, %v3244_v60 }
 0x1a3   :  { %v2548_v8 = vadd.f32 %v1397_v6, %v1312_v2  ;;  %v1399_v9 = vpop.f32.mrb[2].mxu0  ;;  %v309_v2 = vsub.s32 3, %v3244_v60  ;;  %v2506_v60 = vld [vmem:[%s3294_s6] ss:$0 sm:$0xff]  ;;  %s3128_s6 = smov [#allocation10]  }
 0x1a4   :  { %v2550_v10 = vadd.f32 %v1399_v9, %v1314_v4  ;;  %v1401_v11 = vpop.f32.mrb[3].mxu0  ;;  %v1533_v14 = vmax.f32 %v2546_v5, 0.0  ;;  %v306_v3 = vrot.slane %v3250_v62, %v305_v1  ;;  %s2236_s10 = sshll.u32 %s3128_s6, 4  ;;  %s2237_s10 = int_to_ptr.vmem [resolvable:$true] %s2236_s10 }
 0x1a5   :  { %v2552_v13 = vadd.f32 %v1401_v11, %v1316_v7  ;;  %v1534_v17 = vmax.f32 %v2548_v8, 0.0  ;;  %v310_v4 = vrot.slane %v3250_v62, %v309_v2  ;;  %v2987_v62 = vld [vmem:[#allocation8 + $0x30] sm:$0xff]   ;;  %s3086_s11 = scalar_lea.vmem %s2237_s10, 256  ;;  %p3091_p5 = scmp.lt.s32.totalorder %s2237_s10, %s2237_s10 }
 0x1a6   :  { %v1537_v16 = vmax.f32 %v2550_v10, 0.0  ;;  %p3087_p4 = scmp.ne.s32.totalorder %s2237_s10, %s3086_s11  ;;  %p3092_p6 = scmp.lt.s32.totalorder %s3086_s11, %s3086_s11 }
 0x1a7   :  { %v1538_v18 = vmax.f32 %v2552_v13, 0.0 }
 0x1a8   :  { %v1541_v19 = vpack.c.bf16 %v1537_v16, %v1533_v14  ;;  %p3093_p7 = por %p3092_p6, %p3091_p5 }
 0x1a9   :  { %v1542_v20 = vpack.c.bf16 %v1538_v18, %v1534_v17 }
 0x1aa   :  { %p3094_p8 = pnand %p3093_p7, %p3087_p4 }
 0x1ab   :  { %1973 = vmatprep.mubr.bf16.mxu0 %v1542_v20 }
 0x1ac   :  { %1974 = vmatmul.mubr.bf16.vlgmr.msra.gmra.mrb[4].mxu0 %v1541_v19 }
 0x1ad   :  { %1985 = vmatpush1.bf16.msra.mxu0 %v2926_v22  ;;  %v2985_v22 = vld [vmem:[#allocation8 + $0x28] sm:$0xff]  }
 0x1ae   :  { %1986 = vmatprep.subr.bf16.mxu0 %v2931_v23  ;;  %2534 = vmatpush3.bf16.msra.mxu1 %v2985_v22  ;;  %v2986_v23 = vld [vmem:[#allocation8 + $0x70] sm:$0xff]  }
 0x1af   :  { %2535 = vmatprep.subr.bf16.mxu1 %v2986_v23 }
 0x1b1   :  { %1987 = vmatpush1.bf16.msra.mxu0 %v2929_v26  ;;  %v1614_v26 = vrot.slane %v1609_v15, %v297_v61 }
 0x1b2   :  { %1988 = vmatprep.subr.bf16.mxu0 %v2934_v44  ;;  %2536 = vmatpush3.bf16.msra.mxu1 %v2987_v62  ;;  %v1618_v44 = vrot.slane %v1609_v15, %v301_v63 }
 0x1b3   :  { %2537 = vmatprep.subr.bf16.mxu1 %v2988_v24 }
 0x1b5   :  { %1989 = vmatpush1.bf16.msra.mxu0 %v2932_v29 }
 0x1b6   :  { %1990 = vmatprep.subr.bf16.mxu0 %v2937_v30  ;;  %2538 = vmatpush3.bf16.msra.mxu1 %v2989_v25 }
 0x1b9   :  { %1991 = vmatpush1.bf16.msra.mxu0 %v2935_v12 }
 0x1ba   :  { %1992 = vmatprep.subr.bf16.mxu0 %v2940_v33 }
 0x1bd   :  { %1993 = vmatpush1.bf16.msra.mxu0 %v2938_v35 }
 0x1be   :  { %1994 = vmatprep.subr.bf16.mxu0 %v2943_v36 }
 0x1c1   :  { %1995 = vmatpush1.bf16.msra.mxu0 %v2941_v39 }
 0x1c2   :  { %1996 = vmatprep.subr.bf16.mxu0 %v2946_v40 }
 0x1c5   :  { %1997 = vmatpush1.bf16.msra.mxu0 %v2944_v41 }
 0x1c6   :  { %1998 = vmatprep.subr.bf16.mxu0 %v2949_v42 }
 0x1c9   :  { %1999 = vmatpush1.bf16.msra.mxu0 %v2947_v43 }
 0x1ca   :  { %2000 = vmatprep.subr.bf16.mxu0 %v2952_v45 }
 0x1cd   :  { %2001 = vmatpush1.bf16.msra.mxu0 %v2950_v46 }
 0x1ce   :  { %2002 = vmatprep.subr.bf16.mxu0 %v2955_v47 }
 0x1d1   :  { %2003 = vmatpush1.bf16.msra.mxu0 %v2953_v48 }
 0x1d2   :  { %2004 = vmatprep.subr.bf16.mxu0 %v2958_v49 }
 0x1d5   :  { %2005 = vmatpush1.bf16.msra.mxu0 %v2956_v50 }
 0x1d6   :  { %2006 = vmatprep.subr.bf16.mxu0 %v2961_v51 }
 0x1d9   :  { %2007 = vmatpush1.bf16.msra.mxu0 %v2959_v52 }
 0x1da   :  { %2008 = vmatprep.subr.bf16.mxu0 %v2964_v53 }
 0x1dd   :  { %2009 = vmatpush1.bf16.msra.mxu0 %v2962_v54 }
 0x1de   :  { %2010 = vmatprep.subr.bf16.mxu0 %v2967_v56 }
 0x1e1   :  { %2011 = vmatpush1.bf16.msra.mxu0 %v2965_v57 }
 0x1e2   :  { %2012 = vmatprep.subr.bf16.mxu0 %v2970_v58 }
 0x1e5   :  { %2013 = vmatpush1.bf16.msra.mxu0 %v2968_v59 }
 0x1e6   :  { %2014 = vmatprep.subr.bf16.mxu0 %v2973_v21 }
 0x1e9   :  { %2015 = vmatpush1.bf16.msra.mxu0 %v2971_v0 }
 0x220   :  { %v1524_v5 = vpop.f32.mrb[4].mxu1 }
 0x221   :  { %v2553_v6 = vadd.f32 %v1524_v5, %v306_v3  ;;  %v1526_v7 = vpop.f32.mrb[5].mxu1 }
 0x222   :  { %v2554_v8 = vadd.f32 %v1526_v7, %v310_v4  ;;  %v1528_v9 = vpop.f32.mrb[6].mxu1 }
 0x223   :  { %v2555_v10 = vadd.f32 %v1528_v9, %v306_v3  ;;  %v1530_v11 = vpop.f32.mrb[7].mxu1  ;;  %v1535_v14 = vmax.f32 %v2553_v6, 0.0 }
 0x224   :  { %v2556_v13 = vadd.f32 %v1530_v11, %v310_v4  ;;  %v1536_v17 = vmax.f32 %v2554_v8, 0.0 }
 0x225   :  { %v1539_v16 = vmax.f32 %v2555_v10, 0.0 }
 0x226   :  { %v1540_v18 = vmax.f32 %v2556_v13, 0.0 }
 0x227   :  { %v1543_v19 = vpack.c.bf16 %v1539_v16, %v1535_v14 }
 0x228   :  { %v1544_v20 = vpack.c.bf16 %v1540_v18, %v1536_v17 }
 0x22a   :  { %2016 = vmatprep.mubr.bf16.mxu0 %v1544_v20 }
 0x22b   :  { %2017 = vmatmul.mubr.bf16.vlgmr.msra.gmra.mrb[4].mxu0 %v1543_v19 }
 0x2fe   :  { %v2018_v27 = vpop.f32.mrb[4].mxu0 }
 0x2ff   :  { %v2557_v28 = vadd.f32 %v2018_v27, %v1614_v26  ;;  %v2020_v29 = vpop.f32.mrb[5].mxu0 }
 0x300   :  { %v2558_v30 = vadd.f32 %v2020_v29, %v1618_v44  ;;  %v2022_v31 = vpop.f32.mrb[6].mxu0 }
 0x301   :  { %v2559_v32 = vadd.f32 %v2022_v31, %v1614_v26  ;;  %v2024_v12 = vpop.f32.mrb[7].mxu0  ;;  %v2027_v34 = vmax.f32 %v2557_v28, 0.0 }
 0x302   :  { %v2560_v33 = vadd.f32 %v2024_v12, %v1618_v44  ;;  %v2028_v35 = vmax.f32 %v2558_v30, 0.0 }
 0x303   :  { %v2029_v55 = vmax.f32 %v2559_v32, 0.0 }
 0x304   :  { %v2030_v36 = vmax.f32 %v2560_v33, 0.0 }
 0x305   :  { %v2031_v37 = vpack.c.bf16 %v2029_v55, %v2027_v34 }
 0x306   :  { %v2032_v38 = vpack.c.bf16 %v2030_v36, %v2028_v35 }
 0x308   :  { %2200 = vmatprep.mubr.bf16.mxu1 %v2032_v38 }
 0x309   :  { %2201 = vmatmul.mubr.bf16.vlgmr.msra.gmra.mrb[8].mxu1 %v2031_v37 }
 0x3dc   :  { %v2539_v61 = vpop.f32.mrb[8].mxu1 }
 0x3dd   :  { %v2540_v39 = vpop.f32.mrb[9].mxu1 }
 0x3de   :  { %v2541_v63 = vadd.f32 %v2540_v39, %v2539_v61  ;;  %v2542_v40 = vpop.f32.mrb[10].mxu1 }
 0x3df   :  { %v2543_v41 = vpop.f32.mrb[11].mxu1 }
 0x3e0   :  { %v2544_v42 = vadd.f32 %v2543_v41, %v2542_v40  ;;  %v2203_v43 = vadd.f32 %v2541_v63, %v2506_v60 }
 0x3e2   :  { %2209 = vmax.xlane.f32.xlu0 %v2203_v43  ;;  %v2206_v45 = vadd.f32 %v2544_v42, %v2506_v60 }
 0x3e6   :  { %2211 = vmax.xlane.f32.xlu0 %v2206_v45 }
 0x46f   :  { %v2210_v46 = vpop.xlane.xlu0 %2209 }
 0x470   :  { %v2213_v47 = vsub.f32 %v2203_v43, %v2210_v46 }
 0x472   :  { %v2215_v48 = vmul.f32 1.442695, %v2213_v47 }
 0x473   :  { %v2212_v49 = vpop.xlane.xlu0 %2211 }
 0x474   :  { %v2214_v50 = vsub.f32 %v2206_v45, %v2212_v49  ;;  %2990 = vpow2.f32 %v2215_v48 }
 0x476   :  { %v2217_v51 = vmul.f32 1.442695, %v2214_v50 }
 0x478   :  { %2992 = vpow2.f32 %v2217_v51 }
 0x47e   :  { %v2991_v52 = vpop.eup %2990 }
 0x47f   :  { %2219 = vadd.xlane.f32.xlu1 %v2991_v52 }
 0x482   :  { %v2993_v53 = vpop.eup %2992 }
 0x483   :  { %2221 = vadd.xlane.f32.xlu1 %v2993_v53 }
 0x50c   :  { %v2220_v54 = vpop.xlane.xlu1 %2219 }
 0x50d   :  { %2994 = vlog2.f32 %v2220_v54 }
 0x510   :  { %v2222_v56 = vpop.xlane.xlu1 %2221 }
 0x511   :  { %2996 = vlog2.f32 %v2222_v56 }
 0x517   :  { %v2995_v57 = vpop.eup %2994 }
 0x518   :  { %v2224_v58 = vmul.f32 0.6931472, %v2995_v57 }
 0x51a   :  { %v2227_v59 = vsub.f32 %v2213_v47, %v2224_v58 }
 0x51b   :  { %v2997_v21 = vpop.eup %2996 }
 0x51c   :  { %2229 = vst [vmem:[#allocation10] sm:$0xff] %v2227_v59  ;;  %v2226_v0 = vmul.f32 0.6931472, %v2997_v21 }
 0x51e   :  { %v2228_v1 = vsub.f32 %v2214_v50, %v2226_v0 }
 0x520   :  { %2230 = vst [vmem:[#allocation10 + $0x8] sm:$0xff] %v2228_v1 }
 0x521   :  { %3097 = shalt.err (!%p3094_p8)
}
 0x522   :  { %s3098_s14 = scalar_lea.hbm %s3295_s7, 256 }
 0x523   :  { %p3099_p9 = scmp.ne.s32.totalorder %s3295_s7, %s3098_s14  ;;  %p3102_p10 = scmp.lt.u32.totalorder %s3098_s14, %s3295_s7 }
 0x525   :  { %p3104_p11 = pnand %p3102_p10, %p3099_p9 }
 0x527   :  { %3107 = shalt.err (!%p3104_p11)
}
 0x528   :  { %2242 = dma.vmem_to_hbm [thread:$0]  %s2237_s10, 256, %s3295_s7, [#allocation4], %s3123_s0, %s3123_s0, %s3124_s15  }
 0x529   :  { %3114 = dma.done.wait [#allocation4], 256  }
 0x52a   :  { %3115 = vsyncadd [#allocation4], 4294967040 }
 0x52b   :  { %2246 = vsyncpa [#allocation3], 1 }
 0x52c   :  { %2247 = vsyncpa [#allocation6], 1 }
 0x52d   :  { %2248 = vsyncpa [#allocation9], 1 }
 0x52e   :  { %2249 = vsyncpa [#allocation4], 1 }

</bundles_post_ra>
